<compile_context>
chip_gen: v6e
topology: v6e:2x2x1
jax: 0.10.0
libtpu: 0.0.40
codegen_flags: <defaults>
</compile_context>

<pallas_src>
import math

import jax
import jax.numpy as jnp
from jax.experimental import pallas as pl
from jax.experimental.pallas import tpu as pltpu

HIDDEN = 64
LANE = 128  # lane-dense padded width for the output (actions) dim


def _round_up(x, m):
    return ((x + m - 1) // m) * m


def qnet_kernel(x_ref,
                w1_ref, b1_ref,
                w2_ref, b2_ref,
                w3_ref, b3_ref,
                w4_ref, b4_ref,
                o_ref):
    """Fused 4-layer MLP forward for one (tb, states) batch tile.

    x arrives f32 and is cast to bf16 in-kernel; weights are bf16 (MXU-native);
    accumulation is f32. Intermediates stay in vregs — no HBM round-trips
    between layers.
    """
    x = x_ref[...].astype(jnp.bfloat16)

    h = jnp.dot(x, w1_ref[...], preferred_element_type=jnp.float32) + b1_ref[...]
    h = jnp.maximum(h, 0.0).astype(jnp.bfloat16)

    h = jnp.dot(h, w2_ref[...], preferred_element_type=jnp.float32) + b2_ref[...]
    h = jnp.maximum(h, 0.0).astype(jnp.bfloat16)

    h = jnp.dot(h, w3_ref[...], preferred_element_type=jnp.float32) + b3_ref[...]
    h = jnp.maximum(h, 0.0).astype(jnp.bfloat16)

    out = jnp.dot(h, w4_ref[...], preferred_element_type=jnp.float32) + b4_ref[...]
    o_ref[...] = out  # lane-dense (tb, 128) unmasked store


def prepare_qnet_params(params):
    """One-time conversion of f32 PyTorch-layout params to kernel-ready form.

    Call once at init / after each optimizer step — NOT on every forward.
    Weights stored (in, out); w4/b4 zero-padded to 128 lanes; weights bf16,
    biases f32.
    """
    actions = params["w4"].shape[1]
    return {
        "w1": params["w1"].astype(jnp.bfloat16),
        "w2": params["w2"].astype(jnp.bfloat16),
        "w3": params["w3"].astype(jnp.bfloat16),
        "w4": jnp.pad(params["w4"], ((0, 0), (0, LANE - actions))).astype(jnp.bfloat16),
        "b1": params["b1"],
        "b2": params["b2"],
        "b3": params["b3"],
        "b4": jnp.pad(params["b4"], ((0, 0), (0, LANE - actions))),
    }


def qnet_forward(x, kparams, *, actions, block_b=1024):
    """Run QNet forward.

    x:        (B, states) f32
    kparams:  output of prepare_qnet_params (bf16 weights, lane-padded w4/b4)
    returns:  (B, actions) f32 Q-values.
    """
    B, states = x.shape

    # Single tile covering the whole batch whenever it fits; 16-sublane rounding
    # matches bf16 packing. Total VMEM footprint stays well under 1 MiB even at
    # tb=1024, so no vmem_limit_bytes needed (also fine on v7x's 64 MiB).
    tb = min(block_b, _round_up(max(B, 1), 16))
    Bp = _round_up(B, tb)
    if Bp != B:
        x = jnp.pad(x, ((0, Bp - B), (0, 0)))

    num_tiles = Bp // tb
    # Only offer dual-TC (v7x) batch sharding when there are multiple big tiles;
    # a tiny single-tile forward stays on one TensorCore.
    semantics = ("parallel",) if num_tiles > 1 else ("arbitrary",)

    def const(shape):
        # Constant block index => DMA once, stays resident in VMEM.
        return pl.BlockSpec(shape, lambda i: (0, 0))

    out_padded = pl.pallas_call(
        qnet_kernel,
        out_shape=jax.ShapeDtypeStruct((Bp, LANE), jnp.float32),
        grid=(num_tiles,),
        in_specs=[
            pl.BlockSpec((tb, states), lambda i: (i, 0)),   # x: tiled over batch
            const((states, HIDDEN)), const((1, HIDDEN)),    # w1 / b1 (resident)
            const((HIDDEN, HIDDEN)), const((1, HIDDEN)),    # w2 / b2
            const((HIDDEN, HIDDEN)), const((1, HIDDEN)),    # w3 / b3
            const((HIDDEN, LANE)),   const((1, LANE)),      # w4 / b4 (lane-padded)
        ],
        out_specs=pl.BlockSpec((tb, LANE), lambda i: (i, 0)),
        compiler_params=pltpu.CompilerParams(dimension_semantics=semantics),
    )(x, kparams["w1"], kparams["b1"], kparams["w2"], kparams["b2"],
      kparams["w3"], kparams["b3"], kparams["w4"], kparams["b4"])

    return out_padded[:B, :actions]


def init_qnet_params(key, states, actions, hidden=HIDDEN):
    """Deterministic PyTorch-style (Kaiming-uniform-ish) init; weights stored (in, out)."""
    dims = [(states, hidden), (hidden, hidden), (hidden, hidden), (hidden, actions)]
    params = {}
    for i, (fan_in, fan_out) in enumerate(dims, start=1):
        key, kw, kb = jax.random.split(key, 3)
        bound = 1.0 / math.sqrt(fan_in)
        params[f"w{i}"] = jax.random.uniform(
            kw, (fan_in, fan_out), jnp.float32, minval=-bound, maxval=bound)
        params[f"b{i}"] = jax.random.uniform(
            kb, (1, fan_out), jnp.float32, minval=-bound, maxval=bound)
    return params


def qnet_reference_bf16(x, params):
    """Pure-JAX reference replicating the kernel's bf16-operand / f32-accum math."""
    wb = lambda k: params[k].astype(jnp.bfloat16)
    h = x.astype(jnp.bfloat16)
    h = jnp.maximum(jnp.dot(h, wb("w1"), preferred_element_type=jnp.float32)
                    + params["b1"], 0.0).astype(jnp.bfloat16)
    h = jnp.maximum(jnp.dot(h, wb("w2"), preferred_element_type=jnp.float32)
                    + params["b2"], 0.0).astype(jnp.bfloat16)
    h = jnp.maximum(jnp.dot(h, wb("w3"), preferred_element_type=jnp.float32)
                    + params["b3"], 0.0).astype(jnp.bfloat16)
    return jnp.dot(h, wb("w4"), preferred_element_type=jnp.float32) + params["b4"]


def qnet_reference_f32(x, params):
    """Full-precision reference for a loose sanity check."""
    h = jnp.maximum(x @ params["w1"] + params["b1"], 0.0)
    h = jnp.maximum(h @ params["w2"] + params["b2"], 0.0)
    h = jnp.maximum(h @ params["w3"] + params["b3"], 0.0)
    return h @ params["w4"] + params["b4"]


if __name__ == "__main__":
    # LunarLander-v2: 8-dim observation, 4 discrete actions.
    # B=300 exercises 16-row rounding (tb=304, grid=(1,)) and tail padding.
    STATES, ACTIONS, BATCH = 8, 4, 300

    key = jax.random.PRNGKey(0)
    key, kx = jax.random.split(key)
    x = jax.random.normal(kx, (BATCH, STATES), dtype=jnp.float32)

    params = init_qnet_params(key, STATES, ACTIONS)
    kparams = prepare_qnet_params(params)   # one-time bf16 cast + lane padding

    # jit the whole forward (pad + pallas_call + output slice).
    qnet_apply = jax.jit(qnet_forward, static_argnames=("actions", "block_b"))

    out = qnet_apply(x, kparams, actions=ACTIONS)
    out = jax.block_until_ready(out)
    assert out.shape == (BATCH, ACTIONS)

    ref_bf16 = qnet_reference_bf16(x, params)
    assert jnp.allclose(out, ref_bf16, atol=2e-3, rtol=2e-3), "mismatch vs bf16 reference"

    ref_f32 = qnet_reference_f32(x, params)
    assert jnp.allclose(out, ref_f32, atol=5e-2, rtol=5e-2), "mismatch vs f32 reference"

    print("KERNEL_OK")
</pallas_src>

<mosaic_0001>
module attributes {stable_mosaic.version = 11 : i64} {
  func.func @qnet_kernel(%arg0: i32, %arg1: memref<304x8xf32, #tpu.memory_space<vmem>>, %arg2: memref<8x64xbf16, #tpu.memory_space<vmem>>, %arg3: memref<1x64xf32, #tpu.memory_space<vmem>>, %arg4: memref<64x64xbf16, #tpu.memory_space<vmem>>, %arg5: memref<1x64xf32, #tpu.memory_space<vmem>>, %arg6: memref<64x64xbf16, #tpu.memory_space<vmem>>, %arg7: memref<1x64xf32, #tpu.memory_space<vmem>>, %arg8: memref<64x128xbf16, #tpu.memory_space<vmem>>, %arg9: memref<1x128xf32, #tpu.memory_space<vmem>>, %arg10: memref<304x128xf32, #tpu.memory_space<vmem>>) attributes {dimension_semantics = [#tpu.dimension_semantics<arbitrary>], iteration_bounds = array<i64: 1>, scalar_prefetch = 0 : i64, scratch_operands = 0 : i64, tpu.core_type = #tpu.core_type<tc>, window_params = [{transform_indices = @transform_0, window_bounds = array<i64: 304, 8>}, {pipeline_mode = #tpu.pipeline_mode<synchronous>, transform_indices = @transform_1, window_bounds = array<i64: 8, 64>}, {pipeline_mode = #tpu.pipeline_mode<synchronous>, transform_indices = @transform_2, window_bounds = array<i64: 1, 64>}, {pipeline_mode = #tpu.pipeline_mode<synchronous>, transform_indices = @transform_3, window_bounds = array<i64: 64, 64>}, {pipeline_mode = #tpu.pipeline_mode<synchronous>, transform_indices = @transform_4, window_bounds = array<i64: 1, 64>}, {pipeline_mode = #tpu.pipeline_mode<synchronous>, transform_indices = @transform_5, window_bounds = array<i64: 64, 64>}, {pipeline_mode = #tpu.pipeline_mode<synchronous>, transform_indices = @transform_6, window_bounds = array<i64: 1, 64>}, {pipeline_mode = #tpu.pipeline_mode<synchronous>, transform_indices = @transform_7, window_bounds = array<i64: 64, 128>}, {pipeline_mode = #tpu.pipeline_mode<synchronous>, transform_indices = @transform_8, window_bounds = array<i64: 1, 128>}, {transform_indices = @transform_9, window_bounds = array<i64: 304, 128>}]} {
    %c0 = arith.constant 0 : index
    %c0_0 = arith.constant 0 : index
    %0 = vector.load %arg1[%c0, %c0_0] : memref<304x8xf32, #tpu.memory_space<vmem>>, vector<304x8xf32>
    %1 = arith.truncf %0 : vector<304x8xf32> to vector<304x8xbf16>
    %c0_1 = arith.constant 0 : index
    %c0_2 = arith.constant 0 : index
    %2 = vector.load %arg2[%c0_1, %c0_2] : memref<8x64xbf16, #tpu.memory_space<vmem>>, vector<8x64xbf16>
    %cst = arith.constant dense<0.000000e+00> : vector<304x64xf32>
    %3 = tpu.matmul %1, %2, %cst {dimension_numbers = #tpu.dot_dimension_numbers<[1], [0], [0], [1], [0, 0, 1, 1], [], []>} : vector<304x8xbf16>, vector<8x64xbf16>, vector<304x64xf32> -> vector<304x64xf32>
    %c0_3 = arith.constant 0 : index
    %c0_4 = arith.constant 0 : index
    %4 = vector.load %arg3[%c0_3, %c0_4] : memref<1x64xf32, #tpu.memory_space<vmem>>, vector<1x64xf32>
    %5 = vector.broadcast %4 : vector<1x64xf32> to vector<304x64xf32>
    %6 = arith.addf %3, %5 : vector<304x64xf32>
    %cst_5 = arith.constant 0.000000e+00 : f32
    %7 = vector.broadcast %cst_5 : f32 to vector<304x64xf32>
    %8 = arith.maximumf %6, %7 : vector<304x64xf32>
    %9 = arith.truncf %8 : vector<304x64xf32> to vector<304x64xbf16>
    %c0_6 = arith.constant 0 : index
    %c0_7 = arith.constant 0 : index
    %10 = vector.load %arg4[%c0_6, %c0_7] : memref<64x64xbf16, #tpu.memory_space<vmem>>, vector<64x64xbf16>
    %cst_8 = arith.constant dense<0.000000e+00> : vector<304x64xf32>
    %11 = tpu.matmul %9, %10, %cst_8 {dimension_numbers = #tpu.dot_dimension_numbers<[1], [0], [0], [1], [0, 0, 1, 1], [], []>} : vector<304x64xbf16>, vector<64x64xbf16>, vector<304x64xf32> -> vector<304x64xf32>
    %c0_9 = arith.constant 0 : index
    %c0_10 = arith.constant 0 : index
    %12 = vector.load %arg5[%c0_9, %c0_10] : memref<1x64xf32, #tpu.memory_space<vmem>>, vector<1x64xf32>
    %13 = vector.broadcast %12 : vector<1x64xf32> to vector<304x64xf32>
    %14 = arith.addf %11, %13 : vector<304x64xf32>
    %cst_11 = arith.constant 0.000000e+00 : f32
    %15 = vector.broadcast %cst_11 : f32 to vector<304x64xf32>
    %16 = arith.maximumf %14, %15 : vector<304x64xf32>
    %17 = arith.truncf %16 : vector<304x64xf32> to vector<304x64xbf16>
    %c0_12 = arith.constant 0 : index
    %c0_13 = arith.constant 0 : index
    %18 = vector.load %arg6[%c0_12, %c0_13] : memref<64x64xbf16, #tpu.memory_space<vmem>>, vector<64x64xbf16>
    %cst_14 = arith.constant dense<0.000000e+00> : vector<304x64xf32>
    %19 = tpu.matmul %17, %18, %cst_14 {dimension_numbers = #tpu.dot_dimension_numbers<[1], [0], [0], [1], [0, 0, 1, 1], [], []>} : vector<304x64xbf16>, vector<64x64xbf16>, vector<304x64xf32> -> vector<304x64xf32>
    %c0_15 = arith.constant 0 : index
    %c0_16 = arith.constant 0 : index
    %20 = vector.load %arg7[%c0_15, %c0_16] : memref<1x64xf32, #tpu.memory_space<vmem>>, vector<1x64xf32>
    %21 = vector.broadcast %20 : vector<1x64xf32> to vector<304x64xf32>
    %22 = arith.addf %19, %21 : vector<304x64xf32>
    %cst_17 = arith.constant 0.000000e+00 : f32
    %23 = vector.broadcast %cst_17 : f32 to vector<304x64xf32>
    %24 = arith.maximumf %22, %23 : vector<304x64xf32>
    %25 = arith.truncf %24 : vector<304x64xf32> to vector<304x64xbf16>
    %c0_18 = arith.constant 0 : index
    %c0_19 = arith.constant 0 : index
    %26 = vector.load %arg8[%c0_18, %c0_19] : memref<64x128xbf16, #tpu.memory_space<vmem>>, vector<64x128xbf16>
    %cst_20 = arith.constant dense<0.000000e+00> : vector<304x128xf32>
    %27 = tpu.matmul %25, %26, %cst_20 {dimension_numbers = #tpu.dot_dimension_numbers<[1], [0], [0], [1], [0, 0, 1, 1], [], []>} : vector<304x64xbf16>, vector<64x128xbf16>, vector<304x128xf32> -> vector<304x128xf32>
    %c0_21 = arith.constant 0 : index
    %c0_22 = arith.constant 0 : index
    %28 = vector.load %arg9[%c0_21, %c0_22] : memref<1x128xf32, #tpu.memory_space<vmem>>, vector<1x128xf32>
    %29 = vector.broadcast %28 : vector<1x128xf32> to vector<304x128xf32>
    %30 = arith.addf %27, %29 : vector<304x128xf32>
    %c0_23 = arith.constant 0 : index
    %c0_24 = arith.constant 0 : index
    %31 = vector.load %arg10[%c0_23, %c0_24] : memref<304x128xf32, #tpu.memory_space<vmem>>, vector<304x128xf32>
    tpu.vector_store %arg10[%c0_23, %c0_24], %30 {strides = array<i32>} : memref<304x128xf32, #tpu.memory_space<vmem>>, vector<304x128xf32>,
    return
  }
  func.func @transform_0(%arg0: i32) -> (i32, i32) {
    %c0_i32 = arith.constant 0 : i32
    %c0_i32_0 = arith.constant 0 : i32
    return %arg0, %c0_i32 : i32, i32
  }
  func.func @transform_1(%arg0: i32) -> (i32, i32) {
    %c0_i32 = arith.constant 0 : i32
    %c0_i32_0 = arith.constant 0 : i32
    %c0_i32_1 = arith.constant 0 : i32
    return %c0_i32, %c0_i32_0 : i32, i32
  }
  func.func @transform_2(%arg0: i32) -> (i32, i32) {
    %c0_i32 = arith.constant 0 : i32
    %c0_i32_0 = arith.constant 0 : i32
    %c0_i32_1 = arith.constant 0 : i32
    return %c0_i32, %c0_i32_0 : i32, i32
  }
  func.func @transform_3(%arg0: i32) -> (i32, i32) {
    %c0_i32 = arith.constant 0 : i32
    %c0_i32_0 = arith.constant 0 : i32
    %c0_i32_1 = arith.constant 0 : i32
    return %c0_i32, %c0_i32_0 : i32, i32
  }
  func.func @transform_4(%arg0: i32) -> (i32, i32) {
    %c0_i32 = arith.constant 0 : i32
    %c0_i32_0 = arith.constant 0 : i32
    %c0_i32_1 = arith.constant 0 : i32
    return %c0_i32, %c0_i32_0 : i32, i32
  }
  func.func @transform_5(%arg0: i32) -> (i32, i32) {
    %c0_i32 = arith.constant 0 : i32
    %c0_i32_0 = arith.constant 0 : i32
    %c0_i32_1 = arith.constant 0 : i32
    return %c0_i32, %c0_i32_0 : i32, i32
  }
  func.func @transform_6(%arg0: i32) -> (i32, i32) {
    %c0_i32 = arith.constant 0 : i32
    %c0_i32_0 = arith.constant 0 : i32
    %c0_i32_1 = arith.constant 0 : i32
    return %c0_i32, %c0_i32_0 : i32, i32
  }
  func.func @transform_7(%arg0: i32) -> (i32, i32) {
    %c0_i32 = arith.constant 0 : i32
    %c0_i32_0 = arith.constant 0 : i32
    %c0_i32_1 = arith.constant 0 : i32
    return %c0_i32, %c0_i32_0 : i32, i32
  }
  func.func @transform_8(%arg0: i32) -> (i32, i32) {
    %c0_i32 = arith.constant 0 : i32
    %c0_i32_0 = arith.constant 0 : i32
    %c0_i32_1 = arith.constant 0 : i32
    return %c0_i32, %c0_i32_0 : i32, i32
  }
  func.func @transform_9(%arg0: i32) -> (i32, i32) {
    %c0_i32 = arith.constant 0 : i32
    %c0_i32_0 = arith.constant 0 : i32
    return %arg0, %c0_i32 : i32, i32
  }
}

</mosaic_0001>

<bundles_post_ra>
// kernel: qnet_forward.1
= control target key start
LH: loop header
LB: loop body
LE: loop exit
PB: predicated region body
PF: predicated region fallthrough
CT: control target
= control target key end

     0   :  { %vm156_vm0 = vcmask 1043456   ;;  %v1927_v0 = vmov 0.0   ;;  %vm1928_vm1 = vmmov 0   ;;  %vm98_vm2 = vcmask 64512   ;;  %s2659_s1 = inlined_call_operand.vmem [shape: bf16[8,64], index: 1, kind: input, shape index: {}]   ;;  %s2660_s0 = inlined_call_operand.vmem [shape: f32[304,8], index: 0, kind: input, shape index: {}]   ;;  %s2661_s3 = inlined_call_operand.vmem [shape: bf16[64,64], index: 3, kind: input, shape index: {}]   ;;  %s2662_s5 = inlined_call_operand.vmem [shape: bf16[64,64], index: 5, kind: input, shape index: {}]   ;;  %s2663_s2 = inlined_call_operand.vmem [shape: f32[1,64], index: 2, kind: input, shape index: {}]   ;;  %s2664_s7 = inlined_call_operand.vmem [shape: bf16[64,128], index: 7, kind: input, shape index: {}]   ;;  %s2665_s4 = inlined_call_operand.vmem [shape: f32[1,64], index: 4, kind: input, shape index: {}]   ;;  %s2666_s6 = inlined_call_operand.vmem [shape: f32[1,64], index: 6, kind: input, shape index: {}]   ;;  %s2667_s8 = inlined_call_operand.vmem [shape: f32[1,128], index: 8, kind: input, shape index: {}]   ;;  %s2668_s9 = inlined_call_operand.vmem [shape: f32[304,128], index: 9, kind: output, shape index: {}]  }
   0x1   :  { %1583 = vmatprep.subr.bf16.mxu0 %v1927_v0  ;;  %v90_v1 = vld [vmem:[%s2659_s1] sm:$0xf]  ;;  %1585 = vmatprep.mubr.msk.bf16.mxu0 %vm1928_vm1, %v1927_v0  ;;  %v34_v3 = vld [vmem:[%s2660_s0 + $0x8] sm:$0xff]  ;;  %v35_v6 = vld [vmem:[%s2660_s0 + $0x10] sm:$0xff]  ;;  %vm441_vm3 = vcmask 523264  }
   0x2   :  { %v33_v2 = vld [vmem:[%s2660_s0] sm:$0xff]  ;;  %v158_v4 = vsel %vm156_vm0, %v90_v1, 0  ;;  %1661 = vmatprep.subr.bf16.mxu1 %v1927_v0  ;;  %1669 = vmatprep.mubr.msk.bf16.mxu1 %vm1928_vm1, %v1927_v0  ;;  %v36_v7 = vld [vmem:[%s2660_s0 + $0x18] sm:$0xff]  ;;  %v38_v10 = vld [vmem:[%s2660_s0 + $0x28] sm:$0xff] }
   0x3   :  { %v71_v5 = vpack.c.bf16 %v34_v3, %v33_v2  ;;  %1584 = vmatpush3.bf16.msra.mxu0 %v158_v4  ;;  %v72_v8 = vpack.c.bf16 %v36_v7, %v35_v6  ;;  %v37_v9 = vld [vmem:[%s2660_s0 + $0x20] sm:$0xff]  ;;  %v39_v12 = vld [vmem:[%s2660_s0 + $0x30] sm:$0xff]  ;;  %v40_v13 = vld [vmem:[%s2660_s0 + $0x38] sm:$0xff] }
   0x4   :  { %1745 = vmatprep.subr.bf16.mxu0 %v1927_v0  ;;  %v73_v11 = vpack.c.bf16 %v38_v10, %v37_v9  ;;  %v1915_v14 = vld [vmem:[%s2661_s3 + $0x18] sm:$0xff]   ;;  %v74_v15 = vpack.c.bf16 %v40_v13, %v39_v12  ;;  %v41_v16 = vld [vmem:[%s2660_s0 + $0x40] sm:$0xff]  ;;  %v42_v17 = vld [vmem:[%s2660_s0 + $0x48] sm:$0xff] }
   0x5   :  { %1662 = vmatpush3.bf16.msra.mxu1 %v1915_v14  ;;  %v75_v18 = vpack.c.bf16 %v42_v17, %v41_v16  ;;  %v43_v19 = vld [vmem:[%s2660_s0 + $0x50] sm:$0xff]  ;;  %v44_v20 = vld [vmem:[%s2660_s0 + $0x58] sm:$0xff]  ;;  %v45_v22 = vld [vmem:[%s2660_s0 + $0x60] sm:$0xff] }
   0x6   :  { %1586 = vmatmul.mubr.msk.bf16.vlgmr.msra.gmra.mxu0 %vm98_vm2, %v71_v5  ;;  %1663 = vmatprep.subr.bf16.mxu1 %v1927_v0  ;;  %v76_v21 = vpack.c.bf16 %v44_v20, %v43_v19  ;;  %v46_v23 = vld [vmem:[%s2660_s0 + $0x68] sm:$0xff]  ;;  %v47_v25 = vld [vmem:[%s2660_s0 + $0x70] sm:$0xff]  ;;  %v48_v26 = vld [vmem:[%s2660_s0 + $0x78] sm:$0xff] }
   0x7   :  { %1589 = vmatprep.mubr.msk.bf16.mxu0 %vm1928_vm1, %v1927_v0  ;;  %v77_v24 = vpack.c.bf16 %v46_v23, %v45_v22  ;;  %v78_v27 = vpack.c.bf16 %v48_v26, %v47_v25  ;;  %v49_v28 = vld [vmem:[%s2660_s0 + $0x80] sm:$0xff]  ;;  %v50_v29 = vld [vmem:[%s2660_s0 + $0x88] sm:$0xff]  ;;  %v1916_v31 = vld [vmem:[%s2661_s3 + $0x10] sm:$0xff]  }
   0x8   :  { %v79_v30 = vpack.c.bf16 %v50_v29, %v49_v28  ;;  %v51_v32 = vld [vmem:[%s2660_s0 + $0x90] sm:$0xff]  ;;  %v52_v33 = vld [vmem:[%s2660_s0 + $0x98] sm:$0xff]  ;;  %v1917_v34 = vld [vmem:[%s2661_s3 + $0x8] sm:$0xff]  }
   0x9   :  { %1664 = vmatpush3.bf16.msra.mxu1 %v1916_v31  ;;  %v80_v35 = vpack.c.bf16 %v52_v33, %v51_v32  ;;  %v1918_v36 = vld [vmem:[%s2661_s3] sm:$0xff]   ;;  %v54_v38 = vld [vmem:[%s2660_s0 + $0xa8] sm:$0xff]  ;;  %v55_v40 = vld [vmem:[%s2660_s0 + $0xb0] sm:$0xff] }
   0xa   :  { %1665 = vmatprep.subr.bf16.mxu1 %v1927_v0  ;;  %v53_v37 = vld [vmem:[%s2660_s0 + $0xa0] sm:$0xff]  ;;  %v56_v41 = vld [vmem:[%s2660_s0 + $0xb8] sm:$0xff]  ;;  %v58_v44 = vld [vmem:[%s2660_s0 + $0xc8] sm:$0xff] }
   0xb   :  { %v81_v39 = vpack.c.bf16 %v54_v38, %v53_v37  ;;  %v82_v42 = vpack.c.bf16 %v56_v41, %v55_v40  ;;  %v57_v43 = vld [vmem:[%s2660_s0 + $0xc0] sm:$0xff]  ;;  %v59_v46 = vld [vmem:[%s2660_s0 + $0xd0] sm:$0xff]  ;;  %v60_v47 = vld [vmem:[%s2660_s0 + $0xd8] sm:$0xff] }
   0xc   :  { %v83_v45 = vpack.c.bf16 %v58_v44, %v57_v43  ;;  %v84_v48 = vpack.c.bf16 %v60_v47, %v59_v46  ;;  %v61_v49 = vld [vmem:[%s2660_s0 + $0xe0] sm:$0xff]  ;;  %v62_v50 = vld [vmem:[%s2660_s0 + $0xe8] sm:$0xff]  ;;  %v63_v52 = vld [vmem:[%s2660_s0 + $0xf0] sm:$0xff] }
   0xd   :  { %1666 = vmatpush3.bf16.msra.mxu1 %v1917_v34  ;;  %v85_v51 = vpack.c.bf16 %v62_v50, %v61_v49  ;;  %v64_v53 = vld [vmem:[%s2660_s0 + $0xf8] sm:$0xff]  ;;  %v65_v55 = vld [vmem:[%s2660_s0 + $0x100] sm:$0xff]  ;;  %v66_v56 = vld [vmem:[%s2660_s0 + $0x108] sm:$0xff] }
   0xe   :  { %1590 = vmatmul.mubr.msk.bf16.gmra.mxu0 %vm98_vm2, %v72_v8  ;;  %1667 = vmatprep.subr.bf16.mxu1 %v1927_v0  ;;  %v86_v54 = vpack.c.bf16 %v64_v53, %v63_v52  ;;  %v87_v57 = vpack.c.bf16 %v66_v56, %v65_v55  ;;  %v67_v58 = vld [vmem:[%s2660_s0 + $0x110] sm:$0xff]  ;;  %v68_v59 = vld [vmem:[%s2660_s0 + $0x118] sm:$0xff]  ;;  %v69_v62 = vld [vmem:[%s2660_s0 + $0x120] sm:$0xff] }
   0xf   :  { %1593 = vmatprep.mubr.msk.bf16.mxu0 %vm1928_vm1, %v1927_v0  ;;  %v1919_v60 = vld [vmem:[%s2662_s5 + $0x18] sm:$0xff]   ;;  %v88_v61 = vpack.c.bf16 %v68_v59, %v67_v58  ;;  %v70_v63 = vld [vmem:[%s2660_s0 + $0x128] sm:$0xff]  ;;  %v1920_v2 = vld [vmem:[%s2662_s5 + $0x10] sm:$0xff]  }
  0x10   :  { %1746 = vmatpush3.bf16.msra.mxu0 %v1919_v60  ;;  %v89_v1 = vpack.c.bf16 %v70_v63, %v69_v62  ;;  %v2187_v3 = vld [vmem:[%s2663_s2] ss:$0 sm:$0xff]  ;;  %v1921_v16 = vld [vmem:[%s2662_s5 + $0x8] sm:$0xff]  }
  0x11   :  { %1668 = vmatpush3.bf16.msra.mxu1 %v1918_v36  ;;  %1747 = vmatprep.subr.bf16.mxu0 %v1927_v0 }
  0x12   :  { %1829 = vmatprep.subr.bf16.mxu1 %v1927_v0 }
  0x14   :  { %1748 = vmatpush3.bf16.msra.mxu0 %v1920_v2 }
  0x15   :  { %1749 = vmatprep.subr.bf16.mxu0 %v1927_v0 }
  0x16   :  { %1594 = vmatmul.mubr.msk.bf16.gmra.mxu0 %vm98_vm2, %v73_v11 }
  0x17   :  { %1597 = vmatprep.mubr.msk.bf16.mxu0 %vm1928_vm1, %v1927_v0 }
  0x18   :  { %1750 = vmatpush3.bf16.msra.mxu0 %v1921_v16 }
  0x19   :  { %1751 = vmatprep.subr.bf16.mxu0 %v1927_v0 }
  0x1e   :  { %1598 = vmatmul.mubr.msk.bf16.gmra.mxu0 %vm98_vm2, %v74_v15 }
  0x1f   :  { %1601 = vmatprep.mubr.msk.bf16.mxu0 %vm1928_vm1, %v1927_v0 }
  0x26   :  { %1602 = vmatmul.mubr.msk.bf16.gmra.mxu0 %vm98_vm2, %v75_v18 }
  0x27   :  { %1605 = vmatprep.mubr.msk.bf16.mxu0 %vm1928_vm1, %v1927_v0 }
  0x2e   :  { %1606 = vmatmul.mubr.msk.bf16.gmra.mxu0 %vm98_vm2, %v76_v21 }
  0x2f   :  { %1609 = vmatprep.mubr.msk.bf16.mxu0 %vm1928_vm1, %v1927_v0 }
  0x36   :  { %1610 = vmatmul.mubr.msk.bf16.gmra.mxu0 %vm98_vm2, %v77_v24 }
  0x37   :  { %1613 = vmatprep.mubr.msk.bf16.mxu0 %vm1928_vm1, %v1927_v0 }
  0x3e   :  { %1614 = vmatmul.mubr.msk.bf16.gmra.mxu0 %vm98_vm2, %v78_v27 }
  0x3f   :  { %1617 = vmatprep.mubr.msk.bf16.mxu0 %vm1928_vm1, %v1927_v0 }
  0x46   :  { %1618 = vmatmul.mubr.msk.bf16.gmra.mxu0 %vm98_vm2, %v79_v30 }
  0x47   :  { %1621 = vmatprep.mubr.msk.bf16.mxu0 %vm1928_vm1, %v1927_v0 }
  0x4e   :  { %1622 = vmatmul.mubr.msk.bf16.gmra.mxu0 %vm98_vm2, %v80_v35  ;;  %v1922_v35 = vld [vmem:[%s2662_s5] sm:$0xff]  }
  0x4f   :  { %1625 = vmatprep.mubr.msk.bf16.mxu0 %vm1928_vm1, %v1927_v0  ;;  %1752 = vmatpush3.bf16.msra.mxu0 %v1922_v35 }
  0x56   :  { %1626 = vmatmul.mubr.msk.bf16.gmra.mxu0 %vm98_vm2, %v81_v39 }
  0x57   :  { %1629 = vmatprep.mubr.msk.bf16.mxu0 %vm1928_vm1, %v1927_v0 }
  0x5e   :  { %1630 = vmatmul.mubr.msk.bf16.gmra.mxu0 %vm98_vm2, %v82_v42 }
  0x5f   :  { %1633 = vmatprep.mubr.msk.bf16.mxu0 %vm1928_vm1, %v1927_v0 }
  0x66   :  { %1634 = vmatmul.mubr.msk.bf16.gmra.mxu0 %vm98_vm2, %v83_v45 }
  0x67   :  { %1637 = vmatprep.mubr.msk.bf16.mxu0 %vm1928_vm1, %v1927_v0 }
  0x6e   :  { %1638 = vmatmul.mubr.msk.bf16.gmra.mxu0 %vm98_vm2, %v84_v48 }
  0x6f   :  { %1641 = vmatprep.mubr.msk.bf16.mxu0 %vm1928_vm1, %v1927_v0 }
  0x76   :  { %1642 = vmatmul.mubr.msk.bf16.gmra.mxu0 %vm98_vm2, %v85_v51 }
  0x77   :  { %1645 = vmatprep.mubr.msk.bf16.mxu0 %vm1928_vm1, %v1927_v0 }
  0x7e   :  { %1646 = vmatmul.mubr.msk.bf16.gmra.mxu0 %vm98_vm2, %v86_v54 }
  0x7f   :  { %1649 = vmatprep.mubr.msk.bf16.mxu0 %vm1928_vm1, %v1927_v0 }
  0x86   :  { %1650 = vmatmul.mubr.msk.bf16.gmra.mxu0 %vm98_vm2, %v87_v57 }
  0x87   :  { %1653 = vmatprep.mubr.msk.bf16.mxu0 %vm1928_vm1, %v1927_v0 }
  0x8e   :  { %1654 = vmatmul.mubr.msk.bf16.gmra.mxu0 %vm98_vm2, %v88_v61 }
  0x8f   :  { %1657 = vmatprep.mubr.msk.bf16.mxu0 %vm1928_vm1, %v1927_v0 }
  0x96   :  { %1658 = vmatmul.mubr.msk.bf16.gmra.mxu0 %vm98_vm2, %v89_v1 }
  0x97   :  { %1753 = vmatprep.mubr.msk.bf16.mxu0 %vm1928_vm1, %v1927_v0 }
  0xc6   :  { %v194_v4 = vpop.f32.mrf.mxu0 }
  0xc7   :  { %v195_v6 = vadd.f32 %v2187_v3, %v194_v4 }
  0xc8   :  { %v1587_v5 = vpop.f32.mrf.mxu0 }
  0xc9   :  { %v345_v10 = vmax.f32 %v195_v6, 0.0 }
  0xca   :  { %v197_v7 = vpop.f32.mrf.mxu0 }
  0xcb   :  { %v198_v8 = vadd.f32 %v2187_v3, %v197_v7 }
  0xcc   :  { %v1588_v9 = vpop.f32.mrf.mxu0 }
  0xcd   :  { %v346_v11 = vmax.f32 %v198_v8, 0.0 }
  0xce   :  { %v202_v12 = vpop.f32.mrf.mxu0 }
  0xcf   :  { %v383_v13 = vpack.c.bf16 %v346_v11, %v345_v10  ;;  %v203_v15 = vadd.f32 %v2187_v3, %v202_v12 }
  0xd0   :  { %v1591_v14 = vpop.f32.mrf.mxu0 }
  0xd1   :  { %1670 = vmatmul.mubr.msk.bf16.vlgmr.msra.gmra.mxu1 %vm441_vm3, %v383_v13  ;;  %v347_v20 = vmax.f32 %v203_v15, 0.0 }
  0xd2   :  { %v205_v17 = vpop.f32.mrf.mxu0  ;;  %1673 = vmatprep.mubr.msk.bf16.mxu1 %vm1928_vm1, %v1927_v0 }
  0xd3   :  { %v206_v18 = vadd.f32 %v2187_v3, %v205_v17 }
  0xd4   :  { %v1592_v19 = vpop.f32.mrf.mxu0 }
  0xd5   :  { %v348_v21 = vmax.f32 %v206_v18, 0.0 }
  0xd6   :  { %v210_v22 = vpop.f32.mrf.mxu0 }
  0xd7   :  { %v384_v23 = vpack.c.bf16 %v348_v21, %v347_v20  ;;  %v211_v25 = vadd.f32 %v2187_v3, %v210_v22 }
  0xd8   :  { %v1595_v24 = vpop.f32.mrf.mxu0 }
  0xd9   :  { %1674 = vmatmul.mubr.msk.bf16.gmra.mxu1 %vm441_vm3, %v384_v23  ;;  %v349_v29 = vmax.f32 %v211_v25, 0.0 }
  0xda   :  { %v213_v26 = vpop.f32.mrf.mxu0  ;;  %1677 = vmatprep.mubr.msk.bf16.mxu1 %vm1928_vm1, %v1927_v0 }
  0xdb   :  { %v214_v27 = vadd.f32 %v2187_v3, %v213_v26 }
  0xdc   :  { %v1596_v28 = vpop.f32.mrf.mxu0 }
  0xdd   :  { %v350_v30 = vmax.f32 %v214_v27, 0.0 }
  0xde   :  { %v218_v31 = vpop.f32.mrf.mxu0 }
  0xdf   :  { %v385_v32 = vpack.c.bf16 %v350_v30, %v349_v29  ;;  %v219_v34 = vadd.f32 %v2187_v3, %v218_v31 }
  0xe0   :  { %v1599_v33 = vpop.f32.mrf.mxu0 }
  0xe1   :  { %1678 = vmatmul.mubr.msk.bf16.gmra.mxu1 %vm441_vm3, %v385_v32  ;;  %v351_v39 = vmax.f32 %v219_v34, 0.0 }
  0xe2   :  { %v221_v36 = vpop.f32.mrf.mxu0  ;;  %1681 = vmatprep.mubr.msk.bf16.mxu1 %vm1928_vm1, %v1927_v0 }
  0xe3   :  { %v222_v37 = vadd.f32 %v2187_v3, %v221_v36 }
  0xe4   :  { %v1600_v38 = vpop.f32.mrf.mxu0 }
  0xe5   :  { %v352_v40 = vmax.f32 %v222_v37, 0.0 }
  0xe6   :  { %v226_v41 = vpop.f32.mrf.mxu0 }
  0xe7   :  { %v386_v42 = vpack.c.bf16 %v352_v40, %v351_v39  ;;  %v227_v44 = vadd.f32 %v2187_v3, %v226_v41 }
  0xe8   :  { %v1603_v43 = vpop.f32.mrf.mxu0 }
  0xe9   :  { %1682 = vmatmul.mubr.msk.bf16.gmra.mxu1 %vm441_vm3, %v386_v42  ;;  %v353_v48 = vmax.f32 %v227_v44, 0.0 }
  0xea   :  { %v229_v45 = vpop.f32.mrf.mxu0  ;;  %1685 = vmatprep.mubr.msk.bf16.mxu1 %vm1928_vm1, %v1927_v0 }
  0xeb   :  { %v230_v46 = vadd.f32 %v2187_v3, %v229_v45 }
  0xec   :  { %v1604_v47 = vpop.f32.mrf.mxu0 }
  0xed   :  { %v354_v49 = vmax.f32 %v230_v46, 0.0 }
  0xee   :  { %v234_v50 = vpop.f32.mrf.mxu0 }
  0xef   :  { %v387_v51 = vpack.c.bf16 %v354_v49, %v353_v48  ;;  %v235_v53 = vadd.f32 %v2187_v3, %v234_v50 }
  0xf0   :  { %v1607_v52 = vpop.f32.mrf.mxu0 }
  0xf1   :  { %1686 = vmatmul.mubr.msk.bf16.gmra.mxu1 %vm441_vm3, %v387_v51  ;;  %v355_v57 = vmax.f32 %v235_v53, 0.0 }
  0xf2   :  { %v237_v54 = vpop.f32.mrf.mxu0  ;;  %1689 = vmatprep.mubr.msk.bf16.mxu1 %vm1928_vm1, %v1927_v0 }
  0xf3   :  { %v238_v55 = vadd.f32 %v2187_v3, %v237_v54 }
  0xf4   :  { %v1608_v56 = vpop.f32.mrf.mxu0 }
  0xf5   :  { %v356_v58 = vmax.f32 %v238_v55, 0.0 }
  0xf6   :  { %v242_v59 = vpop.f32.mrf.mxu0 }
  0xf7   :  { %v388_v60 = vpack.c.bf16 %v356_v58, %v355_v57  ;;  %v243_v62 = vadd.f32 %v2187_v3, %v242_v59 }
  0xf8   :  { %v1611_v61 = vpop.f32.mrf.mxu0 }
  0xf9   :  { %1690 = vmatmul.mubr.msk.bf16.gmra.mxu1 %vm441_vm3, %v388_v60  ;;  %v357_v4 = vmax.f32 %v243_v62, 0.0 }
  0xfa   :  { %v245_v63 = vpop.f32.mrf.mxu0  ;;  %1693 = vmatprep.mubr.msk.bf16.mxu1 %vm1928_vm1, %v1927_v0 }
  0xfb   :  { %v246_v1 = vadd.f32 %v2187_v3, %v245_v63 }
  0xfc   :  { %v1612_v2 = vpop.f32.mrf.mxu0 }
  0xfd   :  { %v358_v5 = vmax.f32 %v246_v1, 0.0 }
  0xfe   :  { %v250_v6 = vpop.f32.mrf.mxu0 }
  0xff   :  { %v389_v7 = vpack.c.bf16 %v358_v5, %v357_v4  ;;  %v251_v9 = vadd.f32 %v2187_v3, %v250_v6 }
 0x100   :  { %v1615_v8 = vpop.f32.mrf.mxu0 }
 0x101   :  { %1694 = vmatmul.mubr.msk.bf16.gmra.mxu1 %vm441_vm3, %v389_v7  ;;  %v359_v13 = vmax.f32 %v251_v9, 0.0 }
 0x102   :  { %v253_v10 = vpop.f32.mrf.mxu0  ;;  %1697 = vmatprep.mubr.msk.bf16.mxu1 %vm1928_vm1, %v1927_v0 }
 0x103   :  { %v254_v11 = vadd.f32 %v2187_v3, %v253_v10 }
 0x104   :  { %v1616_v12 = vpop.f32.mrf.mxu0 }
 0x105   :  { %v360_v14 = vmax.f32 %v254_v11, 0.0 }
 0x106   :  { %v258_v15 = vpop.f32.mrf.mxu0 }
 0x107   :  { %v390_v16 = vpack.c.bf16 %v360_v14, %v359_v13  ;;  %v259_v18 = vadd.f32 %v2187_v3, %v258_v15 }
 0x108   :  { %v1619_v17 = vpop.f32.mrf.mxu0 }
 0x109   :  { %1698 = vmatmul.mubr.msk.bf16.gmra.mxu1 %vm441_vm3, %v390_v16  ;;  %v361_v22 = vmax.f32 %v259_v18, 0.0 }
 0x10a   :  { %v261_v19 = vpop.f32.mrf.mxu0  ;;  %1701 = vmatprep.mubr.msk.bf16.mxu1 %vm1928_vm1, %v1927_v0 }
 0x10b   :  { %v262_v20 = vadd.f32 %v2187_v3, %v261_v19 }
 0x10c   :  { %v1620_v21 = vpop.f32.mrf.mxu0 }
 0x10d   :  { %v362_v23 = vmax.f32 %v262_v20, 0.0 }
 0x10e   :  { %v266_v24 = vpop.f32.mrf.mxu0 }
 0x10f   :  { %v391_v25 = vpack.c.bf16 %v362_v23, %v361_v22  ;;  %v267_v27 = vadd.f32 %v2187_v3, %v266_v24 }
 0x110   :  { %v1623_v26 = vpop.f32.mrf.mxu0 }
 0x111   :  { %1702 = vmatmul.mubr.msk.bf16.gmra.mxu1 %vm441_vm3, %v391_v25  ;;  %v363_v31 = vmax.f32 %v267_v27, 0.0 }
 0x112   :  { %v269_v28 = vpop.f32.mrf.mxu0  ;;  %1705 = vmatprep.mubr.msk.bf16.mxu1 %vm1928_vm1, %v1927_v0 }
 0x113   :  { %v270_v29 = vadd.f32 %v2187_v3, %v269_v28 }
 0x114   :  { %v1624_v30 = vpop.f32.mrf.mxu0 }
 0x115   :  { %v364_v32 = vmax.f32 %v270_v29, 0.0 }
 0x116   :  { %v274_v33 = vpop.f32.mrf.mxu0 }
 0x117   :  { %v392_v34 = vpack.c.bf16 %v364_v32, %v363_v31  ;;  %v275_v36 = vadd.f32 %v2187_v3, %v274_v33 }
 0x118   :  { %v1627_v35 = vpop.f32.mrf.mxu0 }
 0x119   :  { %1706 = vmatmul.mubr.msk.bf16.gmra.mxu1 %vm441_vm3, %v392_v34  ;;  %v365_v40 = vmax.f32 %v275_v36, 0.0 }
 0x11a   :  { %v277_v37 = vpop.f32.mrf.mxu0  ;;  %1709 = vmatprep.mubr.msk.bf16.mxu1 %vm1928_vm1, %v1927_v0 }
 0x11b   :  { %v278_v38 = vadd.f32 %v2187_v3, %v277_v37 }
 0x11c   :  { %v1628_v39 = vpop.f32.mrf.mxu0 }
 0x11d   :  { %v366_v41 = vmax.f32 %v278_v38, 0.0 }
 0x11e   :  { %v282_v42 = vpop.f32.mrf.mxu0 }
 0x11f   :  { %v393_v43 = vpack.c.bf16 %v366_v41, %v365_v40  ;;  %v283_v45 = vadd.f32 %v2187_v3, %v282_v42  ;;  %v1923_v40 = vld [vmem:[%s2664_s7 + $0x18] sm:$0xff]  }
 0x120   :  { %v1631_v44 = vpop.f32.mrf.mxu0  ;;  %1830 = vmatpush3.bf16.msra.mxu1 %v1923_v40 }
 0x121   :  { %1710 = vmatmul.mubr.msk.bf16.gmra.mxu1 %vm441_vm3, %v393_v43  ;;  %v367_v49 = vmax.f32 %v283_v45, 0.0  ;;  %1831 = vmatprep.subr.bf16.mxu1 %v1927_v0 }
 0x122   :  { %v285_v46 = vpop.f32.mrf.mxu0  ;;  %1713 = vmatprep.mubr.msk.bf16.mxu1 %vm1928_vm1, %v1927_v0 }
 0x123   :  { %v286_v47 = vadd.f32 %v2187_v3, %v285_v46 }
 0x124   :  { %v1632_v48 = vpop.f32.mrf.mxu0 }
 0x125   :  { %v368_v50 = vmax.f32 %v286_v47, 0.0 }
 0x126   :  { %v290_v51 = vpop.f32.mrf.mxu0 }
 0x127   :  { %v394_v52 = vpack.c.bf16 %v368_v50, %v367_v49  ;;  %v291_v54 = vadd.f32 %v2187_v3, %v290_v51 }
 0x128   :  { %v1635_v53 = vpop.f32.mrf.mxu0 }
 0x129   :  { %1714 = vmatmul.mubr.msk.bf16.gmra.mxu1 %vm441_vm3, %v394_v52  ;;  %v369_v58 = vmax.f32 %v291_v54, 0.0  ;;  %v1924_v54 = vld [vmem:[%s2664_s7 + $0x10] sm:$0xff]  }
 0x12a   :  { %v293_v55 = vpop.f32.mrf.mxu0  ;;  %1717 = vmatprep.mubr.msk.bf16.mxu1 %vm1928_vm1, %v1927_v0  ;;  %1832 = vmatpush3.bf16.msra.mxu1 %v1924_v54 }
 0x12b   :  { %v294_v56 = vadd.f32 %v2187_v3, %v293_v55  ;;  %1833 = vmatprep.subr.bf16.mxu1 %v1927_v0 }
 0x12c   :  { %v1636_v57 = vpop.f32.mrf.mxu0 }
 0x12d   :  { %v370_v59 = vmax.f32 %v294_v56, 0.0 }
 0x12e   :  { %v298_v60 = vpop.f32.mrf.mxu0 }
 0x12f   :  { %v395_v61 = vpack.c.bf16 %v370_v59, %v369_v58  ;;  %v299_v63 = vadd.f32 %v2187_v3, %v298_v60 }
 0x130   :  { %v1639_v62 = vpop.f32.mrf.mxu0 }
 0x131   :  { %1718 = vmatmul.mubr.msk.bf16.gmra.mxu1 %vm441_vm3, %v395_v61  ;;  %v371_v5 = vmax.f32 %v299_v63, 0.0 }
 0x132   :  { %v301_v1 = vpop.f32.mrf.mxu0  ;;  %1721 = vmatprep.mubr.msk.bf16.mxu1 %vm1928_vm1, %v1927_v0 }
 0x133   :  { %v302_v2 = vadd.f32 %v2187_v3, %v301_v1 }
 0x134   :  { %v1640_v4 = vpop.f32.mrf.mxu0 }
 0x135   :  { %v372_v6 = vmax.f32 %v302_v2, 0.0 }
 0x136   :  { %v306_v7 = vpop.f32.mrf.mxu0 }
 0x137   :  { %v396_v8 = vpack.c.bf16 %v372_v6, %v371_v5  ;;  %v307_v10 = vadd.f32 %v2187_v3, %v306_v7  ;;  %v1925_v5 = vld [vmem:[%s2664_s7 + $0x8] sm:$0xff]  }
 0x138   :  { %v1643_v9 = vpop.f32.mrf.mxu0  ;;  %1834 = vmatpush3.bf16.msra.mxu1 %v1925_v5 }
 0x139   :  { %1722 = vmatmul.mubr.msk.bf16.gmra.mxu1 %vm441_vm3, %v396_v8  ;;  %v373_v14 = vmax.f32 %v307_v10, 0.0  ;;  %1835 = vmatprep.subr.bf16.mxu1 %v1927_v0 }
 0x13a   :  { %v309_v11 = vpop.f32.mrf.mxu0  ;;  %1725 = vmatprep.mubr.msk.bf16.mxu1 %vm1928_vm1, %v1927_v0 }
 0x13b   :  { %v310_v12 = vadd.f32 %v2187_v3, %v309_v11 }
 0x13c   :  { %v1644_v13 = vpop.f32.mrf.mxu0 }
 0x13d   :  { %v374_v15 = vmax.f32 %v310_v12, 0.0 }
 0x13e   :  { %v314_v16 = vpop.f32.mrf.mxu0 }
 0x13f   :  { %v397_v17 = vpack.c.bf16 %v374_v15, %v373_v14  ;;  %v315_v19 = vadd.f32 %v2187_v3, %v314_v16 }
 0x140   :  { %v1647_v18 = vpop.f32.mrf.mxu0 }
 0x141   :  { %1726 = vmatmul.mubr.msk.bf16.gmra.mxu1 %vm441_vm3, %v397_v17  ;;  %v375_v23 = vmax.f32 %v315_v19, 0.0 }
 0x142   :  { %v317_v20 = vpop.f32.mrf.mxu0  ;;  %1729 = vmatprep.mubr.msk.bf16.mxu1 %vm1928_vm1, %v1927_v0 }
 0x143   :  { %v318_v21 = vadd.f32 %v2187_v3, %v317_v20 }
 0x144   :  { %v1648_v22 = vpop.f32.mrf.mxu0 }
 0x145   :  { %v376_v24 = vmax.f32 %v318_v21, 0.0 }
 0x146   :  { %v322_v25 = vpop.f32.mrf.mxu0 }
 0x147   :  { %v398_v26 = vpack.c.bf16 %v376_v24, %v375_v23  ;;  %v323_v28 = vadd.f32 %v2187_v3, %v322_v25  ;;  %v1926_v24 = vld [vmem:[%s2664_s7] sm:$0xff]  }
 0x148   :  { %v1651_v27 = vpop.f32.mrf.mxu0  ;;  %1836 = vmatpush3.bf16.msra.mxu1 %v1926_v24 }
 0x149   :  { %1730 = vmatmul.mubr.msk.bf16.gmra.mxu1 %vm441_vm3, %v398_v26  ;;  %v377_v32 = vmax.f32 %v323_v28, 0.0 }
 0x14a   :  { %v325_v29 = vpop.f32.mrf.mxu0  ;;  %1733 = vmatprep.mubr.msk.bf16.mxu1 %vm1928_vm1, %v1927_v0 }
 0x14b   :  { %v326_v30 = vadd.f32 %v2187_v3, %v325_v29 }
 0x14c   :  { %v1652_v31 = vpop.f32.mrf.mxu0 }
 0x14d   :  { %v378_v33 = vmax.f32 %v326_v30, 0.0 }
 0x14e   :  { %v330_v34 = vpop.f32.mrf.mxu0 }
 0x14f   :  { %v399_v35 = vpack.c.bf16 %v378_v33, %v377_v32  ;;  %v331_v37 = vadd.f32 %v2187_v3, %v330_v34 }
 0x150   :  { %v1655_v36 = vpop.f32.mrf.mxu0 }
 0x151   :  { %1734 = vmatmul.mubr.msk.bf16.gmra.mxu1 %vm441_vm3, %v399_v35  ;;  %v379_v42 = vmax.f32 %v331_v37, 0.0 }
 0x152   :  { %v333_v38 = vpop.f32.mrf.mxu0  ;;  %1737 = vmatprep.mubr.msk.bf16.mxu1 %vm1928_vm1, %v1927_v0 }
 0x153   :  { %v334_v39 = vadd.f32 %v2187_v3, %v333_v38 }
 0x154   :  { %v1656_v41 = vpop.f32.mrf.mxu0 }
 0x155   :  { %v380_v43 = vmax.f32 %v334_v39, 0.0 }
 0x156   :  { %v338_v44 = vpop.f32.mrf.mxu0 }
 0x157   :  { %v400_v45 = vpack.c.bf16 %v380_v43, %v379_v42  ;;  %v339_v47 = vadd.f32 %v2187_v3, %v338_v44 }
 0x158   :  { %v1659_v46 = vpop.f32.mrf.mxu0 }
 0x159   :  { %1738 = vmatmul.mubr.msk.bf16.gmra.mxu1 %vm441_vm3, %v400_v45  ;;  %v381_v51 = vmax.f32 %v339_v47, 0.0 }
 0x15a   :  { %v341_v48 = vpop.f32.mrf.mxu0  ;;  %1741 = vmatprep.mubr.msk.bf16.mxu1 %vm1928_vm1, %v1927_v0 }
 0x15b   :  { %v342_v49 = vadd.f32 %v2187_v3, %v341_v48  ;;  %v2302_v3 = vld [vmem:[%s2665_s4] ss:$0 sm:$0xff] }
 0x15c   :  { %v1660_v50 = vpop.f32.mrf.mxu0 }
 0x15d   :  { %v382_v52 = vmax.f32 %v342_v49, 0.0 }
 0x15f   :  { %v401_v53 = vpack.c.bf16 %v382_v52, %v381_v51 }
 0x161   :  { %1742 = vmatmul.mubr.msk.bf16.gmra.mxu1 %vm441_vm3, %v401_v53 }
 0x162   :  { %1837 = vmatprep.mubr.msk.bf16.mxu1 %vm1928_vm1, %v1927_v0 }
 0x191   :  { %v533_v55 = vpop.f32.mrf.mxu1 }
 0x192   :  { %v534_v57 = vadd.f32 %v2302_v3, %v533_v55 }
 0x193   :  { %v1671_v56 = vpop.f32.mrf.mxu1 }
 0x194   :  { %v684_v61 = vmax.f32 %v534_v57, 0.0 }
 0x195   :  { %v536_v58 = vpop.f32.mrf.mxu1 }
 0x196   :  { %v537_v59 = vadd.f32 %v2302_v3, %v536_v58 }
 0x197   :  { %v1672_v60 = vpop.f32.mrf.mxu1 }
 0x198   :  { %v685_v62 = vmax.f32 %v537_v59, 0.0 }
 0x199   :  { %v541_v63 = vpop.f32.mrf.mxu1 }
 0x19a   :  { %v722_v1 = vpack.c.bf16 %v685_v62, %v684_v61  ;;  %v542_v4 = vadd.f32 %v2302_v3, %v541_v63 }
 0x19b   :  { %v1675_v2 = vpop.f32.mrf.mxu1 }
 0x19c   :  { %1754 = vmatmul.mubr.msk.bf16.vlgmr.msra.gmra.mxu0 %vm441_vm3, %v722_v1  ;;  %v686_v9 = vmax.f32 %v542_v4, 0.0 }
 0x19d   :  { %v544_v6 = vpop.f32.mrf.mxu1  ;;  %1757 = vmatprep.mubr.msk.bf16.mxu0 %vm1928_vm1, %v1927_v0 }
 0x19e   :  { %v545_v7 = vadd.f32 %v2302_v3, %v544_v6 }
 0x19f   :  { %v1676_v8 = vpop.f32.mrf.mxu1 }
 0x1a0   :  { %v687_v10 = vmax.f32 %v545_v7, 0.0 }
 0x1a1   :  { %v549_v11 = vpop.f32.mrf.mxu1 }
 0x1a2   :  { %v723_v12 = vpack.c.bf16 %v687_v10, %v686_v9  ;;  %v550_v14 = vadd.f32 %v2302_v3, %v549_v11 }
 0x1a3   :  { %v1679_v13 = vpop.f32.mrf.mxu1 }
 0x1a4   :  { %1758 = vmatmul.mubr.msk.bf16.gmra.mxu0 %vm441_vm3, %v723_v12  ;;  %v688_v18 = vmax.f32 %v550_v14, 0.0 }
 0x1a5   :  { %v552_v15 = vpop.f32.mrf.mxu1  ;;  %1761 = vmatprep.mubr.msk.bf16.mxu0 %vm1928_vm1, %v1927_v0 }
 0x1a6   :  { %v553_v16 = vadd.f32 %v2302_v3, %v552_v15 }
 0x1a7   :  { %v1680_v17 = vpop.f32.mrf.mxu1 }
 0x1a8   :  { %v689_v19 = vmax.f32 %v553_v16, 0.0 }
 0x1a9   :  { %v557_v20 = vpop.f32.mrf.mxu1 }
 0x1aa   :  { %v724_v21 = vpack.c.bf16 %v689_v19, %v688_v18  ;;  %v558_v23 = vadd.f32 %v2302_v3, %v557_v20 }
 0x1ab   :  { %v1683_v22 = vpop.f32.mrf.mxu1 }
 0x1ac   :  { %1762 = vmatmul.mubr.msk.bf16.gmra.mxu0 %vm441_vm3, %v724_v21  ;;  %v690_v28 = vmax.f32 %v558_v23, 0.0 }
 0x1ad   :  { %v560_v25 = vpop.f32.mrf.mxu1  ;;  %1765 = vmatprep.mubr.msk.bf16.mxu0 %vm1928_vm1, %v1927_v0 }
 0x1ae   :  { %v561_v26 = vadd.f32 %v2302_v3, %v560_v25 }
 0x1af   :  { %v1684_v27 = vpop.f32.mrf.mxu1 }
 0x1b0   :  { %v691_v29 = vmax.f32 %v561_v26, 0.0 }
 0x1b1   :  { %v565_v30 = vpop.f32.mrf.mxu1 }
 0x1b2   :  { %v725_v31 = vpack.c.bf16 %v691_v29, %v690_v28  ;;  %v566_v33 = vadd.f32 %v2302_v3, %v565_v30 }
 0x1b3   :  { %v1687_v32 = vpop.f32.mrf.mxu1 }
 0x1b4   :  { %1766 = vmatmul.mubr.msk.bf16.gmra.mxu0 %vm441_vm3, %v725_v31  ;;  %v692_v37 = vmax.f32 %v566_v33, 0.0 }
 0x1b5   :  { %v568_v34 = vpop.f32.mrf.mxu1  ;;  %1769 = vmatprep.mubr.msk.bf16.mxu0 %vm1928_vm1, %v1927_v0 }
 0x1b6   :  { %v569_v35 = vadd.f32 %v2302_v3, %v568_v34 }
 0x1b7   :  { %v1688_v36 = vpop.f32.mrf.mxu1 }
 0x1b8   :  { %v693_v38 = vmax.f32 %v569_v35, 0.0 }
 0x1b9   :  { %v573_v39 = vpop.f32.mrf.mxu1 }
 0x1ba   :  { %v726_v40 = vpack.c.bf16 %v693_v38, %v692_v37  ;;  %v574_v42 = vadd.f32 %v2302_v3, %v573_v39 }
 0x1bb   :  { %v1691_v41 = vpop.f32.mrf.mxu1 }
 0x1bc   :  { %1770 = vmatmul.mubr.msk.bf16.gmra.mxu0 %vm441_vm3, %v726_v40  ;;  %v694_v46 = vmax.f32 %v574_v42, 0.0 }
 0x1bd   :  { %v576_v43 = vpop.f32.mrf.mxu1  ;;  %1773 = vmatprep.mubr.msk.bf16.mxu0 %vm1928_vm1, %v1927_v0 }
 0x1be   :  { %v577_v44 = vadd.f32 %v2302_v3, %v576_v43 }
 0x1bf   :  { %v1692_v45 = vpop.f32.mrf.mxu1 }
 0x1c0   :  { %v695_v47 = vmax.f32 %v577_v44, 0.0 }
 0x1c1   :  { %v581_v48 = vpop.f32.mrf.mxu1 }
 0x1c2   :  { %v727_v49 = vpack.c.bf16 %v695_v47, %v694_v46  ;;  %v582_v51 = vadd.f32 %v2302_v3, %v581_v48 }
 0x1c3   :  { %v1695_v50 = vpop.f32.mrf.mxu1 }
 0x1c4   :  { %1774 = vmatmul.mubr.msk.bf16.gmra.mxu0 %vm441_vm3, %v727_v49  ;;  %v696_v55 = vmax.f32 %v582_v51, 0.0 }
 0x1c5   :  { %v584_v52 = vpop.f32.mrf.mxu1  ;;  %1777 = vmatprep.mubr.msk.bf16.mxu0 %vm1928_vm1, %v1927_v0 }
 0x1c6   :  { %v585_v53 = vadd.f32 %v2302_v3, %v584_v52 }
 0x1c7   :  { %v1696_v54 = vpop.f32.mrf.mxu1 }
 0x1c8   :  { %v697_v56 = vmax.f32 %v585_v53, 0.0 }
 0x1c9   :  { %v589_v57 = vpop.f32.mrf.mxu1 }
 0x1ca   :  { %v728_v58 = vpack.c.bf16 %v697_v56, %v696_v55  ;;  %v590_v60 = vadd.f32 %v2302_v3, %v589_v57 }
 0x1cb   :  { %v1699_v59 = vpop.f32.mrf.mxu1 }
 0x1cc   :  { %1778 = vmatmul.mubr.msk.bf16.gmra.mxu0 %vm441_vm3, %v728_v58  ;;  %v698_v1 = vmax.f32 %v590_v60, 0.0 }
 0x1cd   :  { %v592_v61 = vpop.f32.mrf.mxu1  ;;  %1781 = vmatprep.mubr.msk.bf16.mxu0 %vm1928_vm1, %v1927_v0 }
 0x1ce   :  { %v593_v62 = vadd.f32 %v2302_v3, %v592_v61 }
 0x1cf   :  { %v1700_v63 = vpop.f32.mrf.mxu1 }
 0x1d0   :  { %v699_v2 = vmax.f32 %v593_v62, 0.0 }
 0x1d1   :  { %v597_v4 = vpop.f32.mrf.mxu1 }
 0x1d2   :  { %v729_v5 = vpack.c.bf16 %v699_v2, %v698_v1  ;;  %v598_v7 = vadd.f32 %v2302_v3, %v597_v4 }
 0x1d3   :  { %v1703_v6 = vpop.f32.mrf.mxu1 }
 0x1d4   :  { %1782 = vmatmul.mubr.msk.bf16.gmra.mxu0 %vm441_vm3, %v729_v5  ;;  %v700_v11 = vmax.f32 %v598_v7, 0.0 }
 0x1d5   :  { %v600_v8 = vpop.f32.mrf.mxu1  ;;  %1785 = vmatprep.mubr.msk.bf16.mxu0 %vm1928_vm1, %v1927_v0 }
 0x1d6   :  { %v601_v9 = vadd.f32 %v2302_v3, %v600_v8 }
 0x1d7   :  { %v1704_v10 = vpop.f32.mrf.mxu1 }
 0x1d8   :  { %v701_v12 = vmax.f32 %v601_v9, 0.0 }
 0x1d9   :  { %v605_v13 = vpop.f32.mrf.mxu1 }
 0x1da   :  { %v730_v14 = vpack.c.bf16 %v701_v12, %v700_v11  ;;  %v606_v16 = vadd.f32 %v2302_v3, %v605_v13 }
 0x1db   :  { %v1707_v15 = vpop.f32.mrf.mxu1 }
 0x1dc   :  { %1786 = vmatmul.mubr.msk.bf16.gmra.mxu0 %vm441_vm3, %v730_v14  ;;  %v702_v20 = vmax.f32 %v606_v16, 0.0 }
 0x1dd   :  { %v608_v17 = vpop.f32.mrf.mxu1  ;;  %1789 = vmatprep.mubr.msk.bf16.mxu0 %vm1928_vm1, %v1927_v0 }
 0x1de   :  { %v609_v18 = vadd.f32 %v2302_v3, %v608_v17 }
 0x1df   :  { %v1708_v19 = vpop.f32.mrf.mxu1 }
 0x1e0   :  { %v703_v21 = vmax.f32 %v609_v18, 0.0 }
 0x1e1   :  { %v613_v22 = vpop.f32.mrf.mxu1 }
 0x1e2   :  { %v731_v23 = vpack.c.bf16 %v703_v21, %v702_v20  ;;  %v614_v25 = vadd.f32 %v2302_v3, %v613_v22 }
 0x1e3   :  { %v1711_v24 = vpop.f32.mrf.mxu1 }
 0x1e4   :  { %1790 = vmatmul.mubr.msk.bf16.gmra.mxu0 %vm441_vm3, %v731_v23  ;;  %v704_v29 = vmax.f32 %v614_v25, 0.0 }
 0x1e5   :  { %v616_v26 = vpop.f32.mrf.mxu1  ;;  %1793 = vmatprep.mubr.msk.bf16.mxu0 %vm1928_vm1, %v1927_v0 }
 0x1e6   :  { %v617_v27 = vadd.f32 %v2302_v3, %v616_v26 }
 0x1e7   :  { %v1712_v28 = vpop.f32.mrf.mxu1 }
 0x1e8   :  { %v705_v30 = vmax.f32 %v617_v27, 0.0 }
 0x1e9   :  { %v621_v31 = vpop.f32.mrf.mxu1 }
 0x1ea   :  { %v732_v32 = vpack.c.bf16 %v705_v30, %v704_v29  ;;  %v622_v34 = vadd.f32 %v2302_v3, %v621_v31 }
 0x1eb   :  { %v1715_v33 = vpop.f32.mrf.mxu1 }
 0x1ec   :  { %1794 = vmatmul.mubr.msk.bf16.gmra.mxu0 %vm441_vm3, %v732_v32  ;;  %v706_v38 = vmax.f32 %v622_v34, 0.0 }
 0x1ed   :  { %v624_v35 = vpop.f32.mrf.mxu1  ;;  %1797 = vmatprep.mubr.msk.bf16.mxu0 %vm1928_vm1, %v1927_v0 }
 0x1ee   :  { %v625_v36 = vadd.f32 %v2302_v3, %v624_v35 }
 0x1ef   :  { %v1716_v37 = vpop.f32.mrf.mxu1 }
 0x1f0   :  { %v707_v39 = vmax.f32 %v625_v36, 0.0 }
 0x1f1   :  { %v629_v40 = vpop.f32.mrf.mxu1 }
 0x1f2   :  { %v733_v41 = vpack.c.bf16 %v707_v39, %v706_v38  ;;  %v630_v43 = vadd.f32 %v2302_v3, %v629_v40 }
 0x1f3   :  { %v1719_v42 = vpop.f32.mrf.mxu1 }
 0x1f4   :  { %1798 = vmatmul.mubr.msk.bf16.gmra.mxu0 %vm441_vm3, %v733_v41  ;;  %v708_v47 = vmax.f32 %v630_v43, 0.0  ;;  %v2407_v42 = vld [vmem:[%s2666_s6] ss:$0 sm:$0xff] }
 0x1f5   :  { %v632_v44 = vpop.f32.mrf.mxu1  ;;  %1801 = vmatprep.mubr.msk.bf16.mxu0 %vm1928_vm1, %v1927_v0 }
 0x1f6   :  { %v633_v45 = vadd.f32 %v2302_v3, %v632_v44 }
 0x1f7   :  { %v1720_v46 = vpop.f32.mrf.mxu1 }
 0x1f8   :  { %v709_v48 = vmax.f32 %v633_v45, 0.0 }
 0x1f9   :  { %v637_v49 = vpop.f32.mrf.mxu1 }
 0x1fa   :  { %v734_v50 = vpack.c.bf16 %v709_v48, %v708_v47  ;;  %v638_v52 = vadd.f32 %v2302_v3, %v637_v49 }
 0x1fb   :  { %v1723_v51 = vpop.f32.mrf.mxu1 }
 0x1fc   :  { %1802 = vmatmul.mubr.msk.bf16.gmra.mxu0 %vm441_vm3, %v734_v50  ;;  %v710_v56 = vmax.f32 %v638_v52, 0.0 }
 0x1fd   :  { %v640_v53 = vpop.f32.mrf.mxu1  ;;  %1805 = vmatprep.mubr.msk.bf16.mxu0 %vm1928_vm1, %v1927_v0 }
 0x1fe   :  { %v641_v54 = vadd.f32 %v2302_v3, %v640_v53 }
 0x1ff   :  { %v1724_v55 = vpop.f32.mrf.mxu1 }
 0x200   :  { %v711_v57 = vmax.f32 %v641_v54, 0.0 }
 0x201   :  { %v645_v58 = vpop.f32.mrf.mxu1 }
 0x202   :  { %v735_v59 = vpack.c.bf16 %v711_v57, %v710_v56  ;;  %v646_v61 = vadd.f32 %v2302_v3, %v645_v58 }
 0x203   :  { %v1727_v60 = vpop.f32.mrf.mxu1 }
 0x204   :  { %1806 = vmatmul.mubr.msk.bf16.gmra.mxu0 %vm441_vm3, %v735_v59  ;;  %v712_v2 = vmax.f32 %v646_v61, 0.0 }
 0x205   :  { %v648_v62 = vpop.f32.mrf.mxu1  ;;  %1809 = vmatprep.mubr.msk.bf16.mxu0 %vm1928_vm1, %v1927_v0 }
 0x206   :  { %v649_v63 = vadd.f32 %v2302_v3, %v648_v62 }
 0x207   :  { %v1728_v1 = vpop.f32.mrf.mxu1 }
 0x208   :  { %v713_v4 = vmax.f32 %v649_v63, 0.0 }
 0x209   :  { %v653_v5 = vpop.f32.mrf.mxu1 }
 0x20a   :  { %v736_v6 = vpack.c.bf16 %v713_v4, %v712_v2  ;;  %v654_v8 = vadd.f32 %v2302_v3, %v653_v5 }
 0x20b   :  { %v1731_v7 = vpop.f32.mrf.mxu1 }
 0x20c   :  { %1810 = vmatmul.mubr.msk.bf16.gmra.mxu0 %vm441_vm3, %v736_v6  ;;  %v714_v12 = vmax.f32 %v654_v8, 0.0 }
 0x20d   :  { %v656_v9 = vpop.f32.mrf.mxu1  ;;  %1813 = vmatprep.mubr.msk.bf16.mxu0 %vm1928_vm1, %v1927_v0 }
 0x20e   :  { %v657_v10 = vadd.f32 %v2302_v3, %v656_v9 }
 0x20f   :  { %v1732_v11 = vpop.f32.mrf.mxu1 }
 0x210   :  { %v715_v13 = vmax.f32 %v657_v10, 0.0 }
 0x211   :  { %v661_v14 = vpop.f32.mrf.mxu1 }
 0x212   :  { %v737_v15 = vpack.c.bf16 %v715_v13, %v714_v12  ;;  %v662_v17 = vadd.f32 %v2302_v3, %v661_v14 }
 0x213   :  { %v1735_v16 = vpop.f32.mrf.mxu1 }
 0x214   :  { %1814 = vmatmul.mubr.msk.bf16.gmra.mxu0 %vm441_vm3, %v737_v15  ;;  %v716_v21 = vmax.f32 %v662_v17, 0.0 }
 0x215   :  { %v664_v18 = vpop.f32.mrf.mxu1  ;;  %1817 = vmatprep.mubr.msk.bf16.mxu0 %vm1928_vm1, %v1927_v0 }
 0x216   :  { %v665_v19 = vadd.f32 %v2302_v3, %v664_v18 }
 0x217   :  { %v1736_v20 = vpop.f32.mrf.mxu1 }
 0x218   :  { %v717_v22 = vmax.f32 %v665_v19, 0.0 }
 0x219   :  { %v669_v23 = vpop.f32.mrf.mxu1 }
 0x21a   :  { %v738_v24 = vpack.c.bf16 %v717_v22, %v716_v21  ;;  %v670_v26 = vadd.f32 %v2302_v3, %v669_v23 }
 0x21b   :  { %v1739_v25 = vpop.f32.mrf.mxu1 }
 0x21c   :  { %1818 = vmatmul.mubr.msk.bf16.gmra.mxu0 %vm441_vm3, %v738_v24  ;;  %v718_v30 = vmax.f32 %v670_v26, 0.0 }
 0x21d   :  { %v672_v27 = vpop.f32.mrf.mxu1  ;;  %1821 = vmatprep.mubr.msk.bf16.mxu0 %vm1928_vm1, %v1927_v0 }
 0x21e   :  { %v673_v28 = vadd.f32 %v2302_v3, %v672_v27 }
 0x21f   :  { %v1740_v29 = vpop.f32.mrf.mxu1 }
 0x220   :  { %v719_v31 = vmax.f32 %v673_v28, 0.0 }
 0x221   :  { %v677_v32 = vpop.f32.mrf.mxu1 }
 0x222   :  { %v739_v33 = vpack.c.bf16 %v719_v31, %v718_v30  ;;  %v678_v35 = vadd.f32 %v2302_v3, %v677_v32 }
 0x223   :  { %v1743_v34 = vpop.f32.mrf.mxu1 }
 0x224   :  { %1822 = vmatmul.mubr.msk.bf16.gmra.mxu0 %vm441_vm3, %v739_v33  ;;  %v720_v39 = vmax.f32 %v678_v35, 0.0 }
 0x225   :  { %v680_v36 = vpop.f32.mrf.mxu1  ;;  %1825 = vmatprep.mubr.msk.bf16.mxu0 %vm1928_vm1, %v1927_v0 }
 0x226   :  { %v681_v37 = vadd.f32 %v2302_v3, %v680_v36 }
 0x227   :  { %v1744_v38 = vpop.f32.mrf.mxu1 }
 0x228   :  { %v721_v40 = vmax.f32 %v681_v37, 0.0 }
 0x22a   :  { %v740_v41 = vpack.c.bf16 %v721_v40, %v720_v39 }
 0x22c   :  { %1826 = vmatmul.mubr.msk.bf16.gmra.mxu0 %vm441_vm3, %v740_v41 }
 0x25c   :  { %v871_v43 = vpop.f32.mrf.mxu0 }
 0x25d   :  { %v872_v45 = vadd.f32 %v2407_v42, %v871_v43 }
 0x25e   :  { %v1755_v44 = vpop.f32.mrf.mxu0 }
 0x25f   :  { %v1022_v3 = vmax.f32 %v872_v45, 0.0 }
 0x260   :  { %v874_v46 = vpop.f32.mrf.mxu0 }
 0x261   :  { %v875_v47 = vadd.f32 %v2407_v42, %v874_v46 }
 0x262   :  { %v1756_v48 = vpop.f32.mrf.mxu0 }
 0x263   :  { %v1023_v49 = vmax.f32 %v875_v47, 0.0 }
 0x264   :  { %v879_v50 = vpop.f32.mrf.mxu0 }
 0x265   :  { %v1060_v51 = vpack.c.bf16 %v1023_v49, %v1022_v3  ;;  %v880_v53 = vadd.f32 %v2407_v42, %v879_v50 }
 0x266   :  { %v1759_v52 = vpop.f32.mrf.mxu0 }
 0x267   :  { %1838 = vmatmul.mubr.msk.bf16.vlgmr.msra.gmra.mxu1 %vm441_vm3, %v1060_v51  ;;  %v1024_v57 = vmax.f32 %v880_v53, 0.0 }
 0x268   :  { %v882_v54 = vpop.f32.mrf.mxu0  ;;  %1841 = vmatprep.mubr.msk.bf16.mxu1 %vm1928_vm1, %v1927_v0 }
 0x269   :  { %v883_v55 = vadd.f32 %v2407_v42, %v882_v54 }
 0x26a   :  { %v1760_v56 = vpop.f32.mrf.mxu0 }
 0x26b   :  { %v1025_v58 = vmax.f32 %v883_v55, 0.0 }
 0x26c   :  { %v887_v59 = vpop.f32.mrf.mxu0 }
 0x26d   :  { %v1061_v60 = vpack.c.bf16 %v1025_v58, %v1024_v57  ;;  %v888_v62 = vadd.f32 %v2407_v42, %v887_v59 }
 0x26e   :  { %v1763_v61 = vpop.f32.mrf.mxu0 }
 0x26f   :  { %1842 = vmatmul.mubr.msk.bf16.gmra.mxu1 %vm441_vm3, %v1061_v60  ;;  %v1026_v4 = vmax.f32 %v888_v62, 0.0 }
 0x270   :  { %v890_v63 = vpop.f32.mrf.mxu0  ;;  %1845 = vmatprep.mubr.msk.bf16.mxu1 %vm1928_vm1, %v1927_v0 }
 0x271   :  { %v891_v1 = vadd.f32 %v2407_v42, %v890_v63 }
 0x272   :  { %v1764_v2 = vpop.f32.mrf.mxu0 }
 0x273   :  { %v1027_v5 = vmax.f32 %v891_v1, 0.0 }
 0x274   :  { %v895_v6 = vpop.f32.mrf.mxu0 }
 0x275   :  { %v1062_v7 = vpack.c.bf16 %v1027_v5, %v1026_v4  ;;  %v896_v9 = vadd.f32 %v2407_v42, %v895_v6 }
 0x276   :  { %v1767_v8 = vpop.f32.mrf.mxu0 }
 0x277   :  { %1846 = vmatmul.mubr.msk.bf16.gmra.mxu1 %vm441_vm3, %v1062_v7  ;;  %v1028_v13 = vmax.f32 %v896_v9, 0.0 }
 0x278   :  { %v898_v10 = vpop.f32.mrf.mxu0  ;;  %1849 = vmatprep.mubr.msk.bf16.mxu1 %vm1928_vm1, %v1927_v0 }
 0x279   :  { %v899_v11 = vadd.f32 %v2407_v42, %v898_v10 }
 0x27a   :  { %v1768_v12 = vpop.f32.mrf.mxu0 }
 0x27b   :  { %v1029_v14 = vmax.f32 %v899_v11, 0.0 }
 0x27c   :  { %v903_v15 = vpop.f32.mrf.mxu0 }
 0x27d   :  { %v1063_v16 = vpack.c.bf16 %v1029_v14, %v1028_v13  ;;  %v904_v18 = vadd.f32 %v2407_v42, %v903_v15 }
 0x27e   :  { %v1771_v17 = vpop.f32.mrf.mxu0 }
 0x27f   :  { %1850 = vmatmul.mubr.msk.bf16.gmra.mxu1 %vm441_vm3, %v1063_v16  ;;  %v1030_v22 = vmax.f32 %v904_v18, 0.0 }
 0x280   :  { %v906_v19 = vpop.f32.mrf.mxu0  ;;  %1853 = vmatprep.mubr.msk.bf16.mxu1 %vm1928_vm1, %v1927_v0 }
 0x281   :  { %v907_v20 = vadd.f32 %v2407_v42, %v906_v19 }
 0x282   :  { %v1772_v21 = vpop.f32.mrf.mxu0 }
 0x283   :  { %v1031_v23 = vmax.f32 %v907_v20, 0.0 }
 0x284   :  { %v911_v24 = vpop.f32.mrf.mxu0 }
 0x285   :  { %v1064_v25 = vpack.c.bf16 %v1031_v23, %v1030_v22  ;;  %v912_v27 = vadd.f32 %v2407_v42, %v911_v24 }
 0x286   :  { %v1775_v26 = vpop.f32.mrf.mxu0 }
 0x287   :  { %1854 = vmatmul.mubr.msk.bf16.gmra.mxu1 %vm441_vm3, %v1064_v25  ;;  %v1032_v31 = vmax.f32 %v912_v27, 0.0 }
 0x288   :  { %v914_v28 = vpop.f32.mrf.mxu0  ;;  %1857 = vmatprep.mubr.msk.bf16.mxu1 %vm1928_vm1, %v1927_v0 }
 0x289   :  { %v915_v29 = vadd.f32 %v2407_v42, %v914_v28 }
 0x28a   :  { %v1776_v30 = vpop.f32.mrf.mxu0 }
 0x28b   :  { %v1033_v32 = vmax.f32 %v915_v29, 0.0 }
 0x28c   :  { %v919_v33 = vpop.f32.mrf.mxu0 }
 0x28d   :  { %v1065_v34 = vpack.c.bf16 %v1033_v32, %v1032_v31  ;;  %v920_v36 = vadd.f32 %v2407_v42, %v919_v33 }
 0x28e   :  { %v1779_v35 = vpop.f32.mrf.mxu0 }
 0x28f   :  { %1858 = vmatmul.mubr.msk.bf16.gmra.mxu1 %vm441_vm3, %v1065_v34  ;;  %v1034_v40 = vmax.f32 %v920_v36, 0.0 }
 0x290   :  { %v922_v37 = vpop.f32.mrf.mxu0  ;;  %1861 = vmatprep.mubr.msk.bf16.mxu1 %vm1928_vm1, %v1927_v0 }
 0x291   :  { %v923_v38 = vadd.f32 %v2407_v42, %v922_v37 }
 0x292   :  { %v1780_v39 = vpop.f32.mrf.mxu0 }
 0x293   :  { %v1035_v41 = vmax.f32 %v923_v38, 0.0 }
 0x294   :  { %v927_v43 = vpop.f32.mrf.mxu0 }
 0x295   :  { %v1066_v44 = vpack.c.bf16 %v1035_v41, %v1034_v40  ;;  %v928_v46 = vadd.f32 %v2407_v42, %v927_v43 }
 0x296   :  { %v1783_v45 = vpop.f32.mrf.mxu0 }
 0x297   :  { %1862 = vmatmul.mubr.msk.bf16.gmra.mxu1 %vm441_vm3, %v1066_v44  ;;  %v1036_v49 = vmax.f32 %v928_v46, 0.0 }
 0x298   :  { %v930_v47 = vpop.f32.mrf.mxu0  ;;  %1865 = vmatprep.mubr.msk.bf16.mxu1 %vm1928_vm1, %v1927_v0 }
 0x299   :  { %v931_v48 = vadd.f32 %v2407_v42, %v930_v47 }
 0x29a   :  { %v1784_v3 = vpop.f32.mrf.mxu0 }
 0x29b   :  { %v1037_v50 = vmax.f32 %v931_v48, 0.0 }
 0x29c   :  { %v935_v51 = vpop.f32.mrf.mxu0 }
 0x29d   :  { %v1067_v52 = vpack.c.bf16 %v1037_v50, %v1036_v49  ;;  %v936_v54 = vadd.f32 %v2407_v42, %v935_v51 }
 0x29e   :  { %v1787_v53 = vpop.f32.mrf.mxu0 }
 0x29f   :  { %1866 = vmatmul.mubr.msk.bf16.gmra.mxu1 %vm441_vm3, %v1067_v52  ;;  %v1038_v58 = vmax.f32 %v936_v54, 0.0 }
 0x2a0   :  { %v938_v55 = vpop.f32.mrf.mxu0  ;;  %1869 = vmatprep.mubr.msk.bf16.mxu1 %vm1928_vm1, %v1927_v0 }
 0x2a1   :  { %v939_v56 = vadd.f32 %v2407_v42, %v938_v55 }
 0x2a2   :  { %v1788_v57 = vpop.f32.mrf.mxu0 }
 0x2a3   :  { %v1039_v59 = vmax.f32 %v939_v56, 0.0 }
 0x2a4   :  { %v943_v60 = vpop.f32.mrf.mxu0 }
 0x2a5   :  { %v1068_v61 = vpack.c.bf16 %v1039_v59, %v1038_v58  ;;  %v944_v63 = vadd.f32 %v2407_v42, %v943_v60 }
 0x2a6   :  { %v1791_v62 = vpop.f32.mrf.mxu0 }
 0x2a7   :  { %1870 = vmatmul.mubr.msk.bf16.gmra.mxu1 %vm441_vm3, %v1068_v61  ;;  %v1040_v5 = vmax.f32 %v944_v63, 0.0 }
 0x2a8   :  { %v946_v1 = vpop.f32.mrf.mxu0  ;;  %1873 = vmatprep.mubr.msk.bf16.mxu1 %vm1928_vm1, %v1927_v0 }
 0x2a9   :  { %v947_v2 = vadd.f32 %v2407_v42, %v946_v1 }
 0x2aa   :  { %v1792_v4 = vpop.f32.mrf.mxu0 }
 0x2ab   :  { %v1041_v6 = vmax.f32 %v947_v2, 0.0 }
 0x2ac   :  { %v951_v7 = vpop.f32.mrf.mxu0 }
 0x2ad   :  { %v1069_v8 = vpack.c.bf16 %v1041_v6, %v1040_v5  ;;  %v952_v10 = vadd.f32 %v2407_v42, %v951_v7 }
 0x2ae   :  { %v1795_v9 = vpop.f32.mrf.mxu0 }
 0x2af   :  { %1874 = vmatmul.mubr.msk.bf16.gmra.mxu1 %vm441_vm3, %v1069_v8  ;;  %v1042_v14 = vmax.f32 %v952_v10, 0.0 }
 0x2b0   :  { %v954_v11 = vpop.f32.mrf.mxu0  ;;  %1877 = vmatprep.mubr.msk.bf16.mxu1 %vm1928_vm1, %v1927_v0 }
 0x2b1   :  { %v955_v12 = vadd.f32 %v2407_v42, %v954_v11 }
 0x2b2   :  { %v1796_v13 = vpop.f32.mrf.mxu0 }
 0x2b3   :  { %v1043_v15 = vmax.f32 %v955_v12, 0.0 }
 0x2b4   :  { %v959_v16 = vpop.f32.mrf.mxu0 }
 0x2b5   :  { %v1070_v17 = vpack.c.bf16 %v1043_v15, %v1042_v14  ;;  %v960_v19 = vadd.f32 %v2407_v42, %v959_v16 }
 0x2b6   :  { %v1799_v18 = vpop.f32.mrf.mxu0 }
 0x2b7   :  { %1878 = vmatmul.mubr.msk.bf16.gmra.mxu1 %vm441_vm3, %v1070_v17  ;;  %v1044_v23 = vmax.f32 %v960_v19, 0.0 }
 0x2b8   :  { %v962_v20 = vpop.f32.mrf.mxu0  ;;  %1881 = vmatprep.mubr.msk.bf16.mxu1 %vm1928_vm1, %v1927_v0 }
 0x2b9   :  { %v963_v21 = vadd.f32 %v2407_v42, %v962_v20 }
 0x2ba   :  { %v1800_v22 = vpop.f32.mrf.mxu0 }
 0x2bb   :  { %v1045_v24 = vmax.f32 %v963_v21, 0.0 }
 0x2bc   :  { %v967_v25 = vpop.f32.mrf.mxu0 }
 0x2bd   :  { %v1071_v26 = vpack.c.bf16 %v1045_v24, %v1044_v23  ;;  %v968_v28 = vadd.f32 %v2407_v42, %v967_v25 }
 0x2be   :  { %v1803_v27 = vpop.f32.mrf.mxu0 }
 0x2bf   :  { %1882 = vmatmul.mubr.msk.bf16.gmra.mxu1 %vm441_vm3, %v1071_v26  ;;  %v1046_v32 = vmax.f32 %v968_v28, 0.0  ;;  %v2505_v27 = vld [vmem:[%s2667_s8] ss:$0 sm:$0xff] }
 0x2c0   :  { %v970_v29 = vpop.f32.mrf.mxu0  ;;  %1885 = vmatprep.mubr.msk.bf16.mxu1 %vm1928_vm1, %v1927_v0 }
 0x2c1   :  { %v971_v30 = vadd.f32 %v2407_v42, %v970_v29 }
 0x2c2   :  { %v1804_v31 = vpop.f32.mrf.mxu0 }
 0x2c3   :  { %v1047_v33 = vmax.f32 %v971_v30, 0.0 }
 0x2c4   :  { %v975_v34 = vpop.f32.mrf.mxu0 }
 0x2c5   :  { %v1072_v35 = vpack.c.bf16 %v1047_v33, %v1046_v32  ;;  %v976_v37 = vadd.f32 %v2407_v42, %v975_v34 }
 0x2c6   :  { %v1807_v36 = vpop.f32.mrf.mxu0 }
 0x2c7   :  { %1886 = vmatmul.mubr.msk.bf16.gmra.mxu1 %vm441_vm3, %v1072_v35  ;;  %v1048_v41 = vmax.f32 %v976_v37, 0.0 }
 0x2c8   :  { %v978_v38 = vpop.f32.mrf.mxu0  ;;  %1889 = vmatprep.mubr.msk.bf16.mxu1 %vm1928_vm1, %v1927_v0 }
 0x2c9   :  { %v979_v39 = vadd.f32 %v2407_v42, %v978_v38 }
 0x2ca   :  { %v1808_v40 = vpop.f32.mrf.mxu0 }
 0x2cb   :  { %v1049_v43 = vmax.f32 %v979_v39, 0.0 }
 0x2cc   :  { %v983_v44 = vpop.f32.mrf.mxu0 }
 0x2cd   :  { %v1073_v45 = vpack.c.bf16 %v1049_v43, %v1048_v41  ;;  %v984_v47 = vadd.f32 %v2407_v42, %v983_v44 }
 0x2ce   :  { %v1811_v46 = vpop.f32.mrf.mxu0 }
 0x2cf   :  { %1890 = vmatmul.mubr.msk.bf16.gmra.mxu1 %vm441_vm3, %v1073_v45  ;;  %v1050_v50 = vmax.f32 %v984_v47, 0.0 }
 0x2d0   :  { %v986_v48 = vpop.f32.mrf.mxu0  ;;  %1893 = vmatprep.mubr.msk.bf16.mxu1 %vm1928_vm1, %v1927_v0 }
 0x2d1   :  { %v987_v3 = vadd.f32 %v2407_v42, %v986_v48 }
 0x2d2   :  { %v1812_v49 = vpop.f32.mrf.mxu0 }
 0x2d3   :  { %v1051_v51 = vmax.f32 %v987_v3, 0.0 }
 0x2d4   :  { %v991_v52 = vpop.f32.mrf.mxu0 }
 0x2d5   :  { %v1074_v53 = vpack.c.bf16 %v1051_v51, %v1050_v50  ;;  %v992_v55 = vadd.f32 %v2407_v42, %v991_v52 }
 0x2d6   :  { %v1815_v54 = vpop.f32.mrf.mxu0 }
 0x2d7   :  { %1894 = vmatmul.mubr.msk.bf16.gmra.mxu1 %vm441_vm3, %v1074_v53  ;;  %v1052_v59 = vmax.f32 %v992_v55, 0.0 }
 0x2d8   :  { %v994_v56 = vpop.f32.mrf.mxu0  ;;  %1897 = vmatprep.mubr.msk.bf16.mxu1 %vm1928_vm1, %v1927_v0 }
 0x2d9   :  { %v995_v57 = vadd.f32 %v2407_v42, %v994_v56 }
 0x2da   :  { %v1816_v58 = vpop.f32.mrf.mxu0 }
 0x2db   :  { %v1053_v60 = vmax.f32 %v995_v57, 0.0 }
 0x2dc   :  { %v999_v61 = vpop.f32.mrf.mxu0 }
 0x2dd   :  { %v1075_v62 = vpack.c.bf16 %v1053_v60, %v1052_v59  ;;  %v1000_v1 = vadd.f32 %v2407_v42, %v999_v61 }
 0x2de   :  { %v1819_v63 = vpop.f32.mrf.mxu0 }
 0x2df   :  { %1898 = vmatmul.mubr.msk.bf16.gmra.mxu1 %vm441_vm3, %v1075_v62  ;;  %v1054_v6 = vmax.f32 %v1000_v1, 0.0 }
 0x2e0   :  { %v1002_v2 = vpop.f32.mrf.mxu0  ;;  %1901 = vmatprep.mubr.msk.bf16.mxu1 %vm1928_vm1, %v1927_v0 }
 0x2e1   :  { %v1003_v4 = vadd.f32 %v2407_v42, %v1002_v2 }
 0x2e2   :  { %v1820_v5 = vpop.f32.mrf.mxu0 }
 0x2e3   :  { %v1055_v7 = vmax.f32 %v1003_v4, 0.0 }
 0x2e4   :  { %v1007_v8 = vpop.f32.mrf.mxu0 }
 0x2e5   :  { %v1076_v9 = vpack.c.bf16 %v1055_v7, %v1054_v6  ;;  %v1008_v11 = vadd.f32 %v2407_v42, %v1007_v8 }
 0x2e6   :  { %v1823_v10 = vpop.f32.mrf.mxu0 }
 0x2e7   :  { %1902 = vmatmul.mubr.msk.bf16.gmra.mxu1 %vm441_vm3, %v1076_v9  ;;  %v1056_v15 = vmax.f32 %v1008_v11, 0.0 }
 0x2e8   :  { %v1010_v12 = vpop.f32.mrf.mxu0  ;;  %1905 = vmatprep.mubr.msk.bf16.mxu1 %vm1928_vm1, %v1927_v0 }
 0x2e9   :  { %v1011_v13 = vadd.f32 %v2407_v42, %v1010_v12 }
 0x2ea   :  { %v1824_v14 = vpop.f32.mrf.mxu0 }
 0x2eb   :  { %v1057_v16 = vmax.f32 %v1011_v13, 0.0 }
 0x2ec   :  { %v1015_v17 = vpop.f32.mrf.mxu0 }
 0x2ed   :  { %v1077_v18 = vpack.c.bf16 %v1057_v16, %v1056_v15  ;;  %v1016_v20 = vadd.f32 %v2407_v42, %v1015_v17 }
 0x2ee   :  { %v1827_v19 = vpop.f32.mrf.mxu0 }
 0x2ef   :  { %1906 = vmatmul.mubr.msk.bf16.gmra.mxu1 %vm441_vm3, %v1077_v18  ;;  %v1058_v24 = vmax.f32 %v1016_v20, 0.0 }
 0x2f0   :  { %v1018_v21 = vpop.f32.mrf.mxu0  ;;  %1909 = vmatprep.mubr.msk.bf16.mxu1 %vm1928_vm1, %v1927_v0 }
 0x2f1   :  { %v1019_v22 = vadd.f32 %v2407_v42, %v1018_v21 }
 0x2f2   :  { %v1828_v23 = vpop.f32.mrf.mxu0 }
 0x2f3   :  { %v1059_v25 = vmax.f32 %v1019_v22, 0.0 }
 0x2f5   :  { %v1078_v26 = vpack.c.bf16 %v1059_v25, %v1058_v24 }
 0x2f7   :  { %1910 = vmatmul.mubr.msk.bf16.gmra.mxu1 %vm441_vm3, %v1078_v26 }
 0x327   :  { %v1209_v28 = vpop.f32.mrf.mxu1 }
 0x328   :  { %v1210_v29 = vadd.f32 %v2505_v27, %v1209_v28 }
 0x329   :  { %v1839_v30 = vpop.f32.mrf.mxu1 }
 0x32a   :  { %1360 = vst [vmem:[%s2668_s9] sm:$0xff] %v1210_v29 }
 0x32b   :  { %v1212_v0 = vpop.f32.mrf.mxu1 }
 0x32c   :  { %v1213_v42 = vadd.f32 %v2505_v27, %v1212_v0 }
 0x32d   :  { %v1840_v31 = vpop.f32.mrf.mxu1 }
 0x32e   :  { %1361 = vst [vmem:[%s2668_s9 + $0x8] sm:$0xff] %v1213_v42 }
 0x32f   :  { %v1217_v32 = vpop.f32.mrf.mxu1 }
 0x330   :  { %v1218_v33 = vadd.f32 %v2505_v27, %v1217_v32 }
 0x331   :  { %v1843_v34 = vpop.f32.mrf.mxu1 }
 0x332   :  { %1362 = vst [vmem:[%s2668_s9 + $0x10] sm:$0xff] %v1218_v33 }
 0x333   :  { %v1220_v35 = vpop.f32.mrf.mxu1 }
 0x334   :  { %v1221_v36 = vadd.f32 %v2505_v27, %v1220_v35 }
 0x335   :  { %v1844_v37 = vpop.f32.mrf.mxu1 }
 0x336   :  { %1363 = vst [vmem:[%s2668_s9 + $0x18] sm:$0xff] %v1221_v36 }
 0x337   :  { %v1225_v38 = vpop.f32.mrf.mxu1 }
 0x338   :  { %v1226_v39 = vadd.f32 %v2505_v27, %v1225_v38 }
 0x339   :  { %v1847_v40 = vpop.f32.mrf.mxu1 }
 0x33a   :  { %1364 = vst [vmem:[%s2668_s9 + $0x20] sm:$0xff] %v1226_v39 }
 0x33b   :  { %v1228_v41 = vpop.f32.mrf.mxu1 }
 0x33c   :  { %v1229_v43 = vadd.f32 %v2505_v27, %v1228_v41 }
 0x33d   :  { %v1848_v44 = vpop.f32.mrf.mxu1 }
 0x33e   :  { %1365 = vst [vmem:[%s2668_s9 + $0x28] sm:$0xff] %v1229_v43 }
 0x33f   :  { %v1233_v45 = vpop.f32.mrf.mxu1 }
 0x340   :  { %v1234_v46 = vadd.f32 %v2505_v27, %v1233_v45 }
 0x341   :  { %v1851_v47 = vpop.f32.mrf.mxu1 }
 0x342   :  { %1366 = vst [vmem:[%s2668_s9 + $0x30] sm:$0xff] %v1234_v46 }
 0x343   :  { %v1236_v48 = vpop.f32.mrf.mxu1 }
 0x344   :  { %v1237_v3 = vadd.f32 %v2505_v27, %v1236_v48 }
 0x345   :  { %v1852_v49 = vpop.f32.mrf.mxu1 }
 0x346   :  { %1367 = vst [vmem:[%s2668_s9 + $0x38] sm:$0xff] %v1237_v3 }
 0x347   :  { %v1241_v50 = vpop.f32.mrf.mxu1 }
 0x348   :  { %v1242_v51 = vadd.f32 %v2505_v27, %v1241_v50 }
 0x349   :  { %v1855_v52 = vpop.f32.mrf.mxu1 }
 0x34a   :  { %1368 = vst [vmem:[%s2668_s9 + $0x40] sm:$0xff] %v1242_v51 }
 0x34b   :  { %v1244_v53 = vpop.f32.mrf.mxu1 }
 0x34c   :  { %v1245_v54 = vadd.f32 %v2505_v27, %v1244_v53 }
 0x34d   :  { %v1856_v55 = vpop.f32.mrf.mxu1 }
 0x34e   :  { %1369 = vst [vmem:[%s2668_s9 + $0x48] sm:$0xff] %v1245_v54 }
 0x34f   :  { %v1249_v56 = vpop.f32.mrf.mxu1 }
 0x350   :  { %v1250_v57 = vadd.f32 %v2505_v27, %v1249_v56 }
 0x351   :  { %v1859_v58 = vpop.f32.mrf.mxu1 }
 0x352   :  { %1370 = vst [vmem:[%s2668_s9 + $0x50] sm:$0xff] %v1250_v57 }
 0x353   :  { %v1252_v59 = vpop.f32.mrf.mxu1 }
 0x354   :  { %v1253_v60 = vadd.f32 %v2505_v27, %v1252_v59 }
 0x355   :  { %v1860_v61 = vpop.f32.mrf.mxu1 }
 0x356   :  { %1371 = vst [vmem:[%s2668_s9 + $0x58] sm:$0xff] %v1253_v60 }
 0x357   :  { %v1257_v62 = vpop.f32.mrf.mxu1 }
 0x358   :  { %v1258_v63 = vadd.f32 %v2505_v27, %v1257_v62 }
 0x359   :  { %v1863_v1 = vpop.f32.mrf.mxu1 }
 0x35a   :  { %1372 = vst [vmem:[%s2668_s9 + $0x60] sm:$0xff] %v1258_v63 }
 0x35b   :  { %v1260_v2 = vpop.f32.mrf.mxu1 }
 0x35c   :  { %v1261_v4 = vadd.f32 %v2505_v27, %v1260_v2 }
 0x35d   :  { %v1864_v5 = vpop.f32.mrf.mxu1 }
 0x35e   :  { %1373 = vst [vmem:[%s2668_s9 + $0x68] sm:$0xff] %v1261_v4 }
 0x35f   :  { %v1265_v6 = vpop.f32.mrf.mxu1 }
 0x360   :  { %v1266_v7 = vadd.f32 %v2505_v27, %v1265_v6 }
 0x361   :  { %v1867_v8 = vpop.f32.mrf.mxu1 }
 0x362   :  { %1374 = vst [vmem:[%s2668_s9 + $0x70] sm:$0xff] %v1266_v7 }
 0x363   :  { %v1268_v9 = vpop.f32.mrf.mxu1 }
 0x364   :  { %v1269_v10 = vadd.f32 %v2505_v27, %v1268_v9 }
 0x365   :  { %v1868_v11 = vpop.f32.mrf.mxu1 }
 0x366   :  { %1375 = vst [vmem:[%s2668_s9 + $0x78] sm:$0xff] %v1269_v10 }
 0x367   :  { %v1273_v12 = vpop.f32.mrf.mxu1 }
 0x368   :  { %v1274_v13 = vadd.f32 %v2505_v27, %v1273_v12 }
 0x369   :  { %v1871_v14 = vpop.f32.mrf.mxu1 }
 0x36a   :  { %1376 = vst [vmem:[%s2668_s9 + $0x80] sm:$0xff] %v1274_v13 }
 0x36b   :  { %v1276_v15 = vpop.f32.mrf.mxu1 }
 0x36c   :  { %v1277_v16 = vadd.f32 %v2505_v27, %v1276_v15 }
 0x36d   :  { %v1872_v17 = vpop.f32.mrf.mxu1 }
 0x36e   :  { %1377 = vst [vmem:[%s2668_s9 + $0x88] sm:$0xff] %v1277_v16 }
 0x36f   :  { %v1281_v18 = vpop.f32.mrf.mxu1 }
 0x370   :  { %v1282_v19 = vadd.f32 %v2505_v27, %v1281_v18 }
 0x371   :  { %v1875_v20 = vpop.f32.mrf.mxu1 }
 0x372   :  { %1378 = vst [vmem:[%s2668_s9 + $0x90] sm:$0xff] %v1282_v19 }
 0x373   :  { %v1284_v21 = vpop.f32.mrf.mxu1 }
 0x374   :  { %v1285_v22 = vadd.f32 %v2505_v27, %v1284_v21 }
 0x375   :  { %v1876_v23 = vpop.f32.mrf.mxu1 }
 0x376   :  { %1379 = vst [vmem:[%s2668_s9 + $0x98] sm:$0xff] %v1285_v22 }
 0x377   :  { %v1289_v24 = vpop.f32.mrf.mxu1 }
 0x378   :  { %v1290_v25 = vadd.f32 %v2505_v27, %v1289_v24 }
 0x379   :  { %v1879_v26 = vpop.f32.mrf.mxu1 }
 0x37a   :  { %1380 = vst [vmem:[%s2668_s9 + $0xa0] sm:$0xff] %v1290_v25 }
 0x37b   :  { %v1292_v28 = vpop.f32.mrf.mxu1 }
 0x37c   :  { %v1293_v29 = vadd.f32 %v2505_v27, %v1292_v28 }
 0x37d   :  { %v1880_v30 = vpop.f32.mrf.mxu1 }
 0x37e   :  { %1381 = vst [vmem:[%s2668_s9 + $0xa8] sm:$0xff] %v1293_v29 }
 0x37f   :  { %v1297_v0 = vpop.f32.mrf.mxu1 }
 0x380   :  { %v1298_v42 = vadd.f32 %v2505_v27, %v1297_v0 }
 0x381   :  { %v1883_v31 = vpop.f32.mrf.mxu1 }
 0x382   :  { %1382 = vst [vmem:[%s2668_s9 + $0xb0] sm:$0xff] %v1298_v42 }
 0x383   :  { %v1300_v32 = vpop.f32.mrf.mxu1 }
 0x384   :  { %v1301_v33 = vadd.f32 %v2505_v27, %v1300_v32 }
 0x385   :  { %v1884_v34 = vpop.f32.mrf.mxu1 }
 0x386   :  { %1383 = vst [vmem:[%s2668_s9 + $0xb8] sm:$0xff] %v1301_v33 }
 0x387   :  { %v1305_v35 = vpop.f32.mrf.mxu1 }
 0x388   :  { %v1306_v36 = vadd.f32 %v2505_v27, %v1305_v35 }
 0x389   :  { %v1887_v37 = vpop.f32.mrf.mxu1 }
 0x38a   :  { %1384 = vst [vmem:[%s2668_s9 + $0xc0] sm:$0xff] %v1306_v36 }
 0x38b   :  { %v1308_v38 = vpop.f32.mrf.mxu1 }
 0x38c   :  { %v1309_v39 = vadd.f32 %v2505_v27, %v1308_v38 }
 0x38d   :  { %v1888_v40 = vpop.f32.mrf.mxu1 }
 0x38e   :  { %1385 = vst [vmem:[%s2668_s9 + $0xc8] sm:$0xff] %v1309_v39 }
 0x38f   :  { %v1313_v41 = vpop.f32.mrf.mxu1 }
 0x390   :  { %v1314_v43 = vadd.f32 %v2505_v27, %v1313_v41 }
 0x391   :  { %v1891_v44 = vpop.f32.mrf.mxu1 }
 0x392   :  { %1386 = vst [vmem:[%s2668_s9 + $0xd0] sm:$0xff] %v1314_v43 }
 0x393   :  { %v1316_v45 = vpop.f32.mrf.mxu1 }
 0x394   :  { %v1317_v46 = vadd.f32 %v2505_v27, %v1316_v45 }
 0x395   :  { %v1892_v47 = vpop.f32.mrf.mxu1 }
 0x396   :  { %1387 = vst [vmem:[%s2668_s9 + $0xd8] sm:$0xff] %v1317_v46 }
 0x397   :  { %v1321_v48 = vpop.f32.mrf.mxu1 }
 0x398   :  { %v1322_v3 = vadd.f32 %v2505_v27, %v1321_v48 }
 0x399   :  { %v1895_v49 = vpop.f32.mrf.mxu1 }
 0x39a   :  { %1388 = vst [vmem:[%s2668_s9 + $0xe0] sm:$0xff] %v1322_v3 }
 0x39b   :  { %v1324_v50 = vpop.f32.mrf.mxu1 }
 0x39c   :  { %v1325_v51 = vadd.f32 %v2505_v27, %v1324_v50 }
 0x39d   :  { %v1896_v52 = vpop.f32.mrf.mxu1 }
 0x39e   :  { %1389 = vst [vmem:[%s2668_s9 + $0xe8] sm:$0xff] %v1325_v51 }
 0x39f   :  { %v1329_v53 = vpop.f32.mrf.mxu1 }
 0x3a0   :  { %v1330_v54 = vadd.f32 %v2505_v27, %v1329_v53 }
 0x3a1   :  { %v1899_v55 = vpop.f32.mrf.mxu1 }
 0x3a2   :  { %1390 = vst [vmem:[%s2668_s9 + $0xf0] sm:$0xff] %v1330_v54 }
 0x3a3   :  { %v1332_v56 = vpop.f32.mrf.mxu1 }
 0x3a4   :  { %v1333_v57 = vadd.f32 %v2505_v27, %v1332_v56 }
 0x3a5   :  { %v1900_v58 = vpop.f32.mrf.mxu1 }
 0x3a6   :  { %1391 = vst [vmem:[%s2668_s9 + $0xf8] sm:$0xff] %v1333_v57 }
 0x3a7   :  { %v1337_v59 = vpop.f32.mrf.mxu1 }
 0x3a8   :  { %v1338_v60 = vadd.f32 %v2505_v27, %v1337_v59 }
 0x3a9   :  { %v1903_v61 = vpop.f32.mrf.mxu1 }
 0x3aa   :  { %1392 = vst [vmem:[%s2668_s9 + $0x100] sm:$0xff] %v1338_v60 }
 0x3ab   :  { %v1340_v62 = vpop.f32.mrf.mxu1 }
 0x3ac   :  { %v1341_v63 = vadd.f32 %v2505_v27, %v1340_v62 }
 0x3ad   :  { %v1904_v1 = vpop.f32.mrf.mxu1 }
 0x3ae   :  { %1393 = vst [vmem:[%s2668_s9 + $0x108] sm:$0xff] %v1341_v63 }
 0x3af   :  { %v1345_v2 = vpop.f32.mrf.mxu1 }
 0x3b0   :  { %v1346_v4 = vadd.f32 %v2505_v27, %v1345_v2 }
 0x3b1   :  { %v1907_v5 = vpop.f32.mrf.mxu1 }
 0x3b2   :  { %1394 = vst [vmem:[%s2668_s9 + $0x110] sm:$0xff] %v1346_v4 }
 0x3b3   :  { %v1348_v6 = vpop.f32.mrf.mxu1 }
 0x3b4   :  { %v1349_v7 = vadd.f32 %v2505_v27, %v1348_v6 }
 0x3b5   :  { %v1908_v8 = vpop.f32.mrf.mxu1 }
 0x3b6   :  { %1395 = vst [vmem:[%s2668_s9 + $0x118] sm:$0xff] %v1349_v7 }
 0x3b7   :  { %v1353_v9 = vpop.f32.mrf.mxu1 }
 0x3b8   :  { %v1354_v10 = vadd.f32 %v2505_v27, %v1353_v9 }
 0x3b9   :  { %v1911_v11 = vpop.f32.mrf.mxu1 }
 0x3ba   :  { %1396 = vst [vmem:[%s2668_s9 + $0x120] sm:$0xff] %v1354_v10 }
 0x3bb   :  { %v1356_v12 = vpop.f32.mrf.mxu1 }
 0x3bc   :  { %v1357_v13 = vadd.f32 %v2505_v27, %v1356_v12 }
 0x3bd   :  { %v1912_v14 = vpop.f32.mrf.mxu1 }
 0x3be   :  { %1397 = vst [vmem:[%s2668_s9 + $0x128] sm:$0xff] %v1357_v13 }

</bundles_post_ra>
